<compile_context>
chip_gen: v7x
topology: tpu7x:2x2x1
jax: 0.10.0
libtpu: 0.0.40
codegen_flags: <defaults>
</compile_context>

<pallas_src>
import jax
import jax.numpy as jnp
from jax.experimental import pallas as pl
from jax.experimental.pallas import tpu as pltpu


def _round_up(x, m):
    return (x + m - 1) // m * m


# ---------------------------------------------------------------------------
# Pallas kernel: fused (embedding lookup folded into layer-1) + LeakyReLU + layer-2
# ---------------------------------------------------------------------------
def _mamo_fused_kernel(ids_ref, wfold_ref, b1_ref, w2_ref, b2_ref, o_ref):
    # ids_ref   : (TB, F)             int32  field ids for this batch tile
    # wfold_ref : (F*Vpad, Hpad)      bf16   blockdiag(tables) @ W1, zero padded
    # b1_ref    : (1, Hpad)           f32
    # w2_ref    : (Hpad, Epad)        bf16
    # b2_ref    : (1, Epad)           f32
    # o_ref     : (TB, Epad)          f32    (lane-dense; wrapper slices to emb_out)
    tb, field_num = ids_ref.shape
    fv, _ = wfold_ref.shape
    vocab_pad = fv // field_num
    compute_dtype = wfold_ref.dtype

    ids = ids_ref[...]                                                  # (TB, F)

    # Combined one-hot over all fields: column c in [f*Vpad, (f+1)*Vpad) is hot
    # iff ids[:, f] == c - f*Vpad.  Pure VPU compares + ORs, no concatenate.
    col = jax.lax.broadcasted_iota(jnp.int32, (tb, fv), 1)              # (TB, F*Vpad)
    hit = col == ids[:, 0:1]
    for f in range(1, field_num):                                       # static loop
        hit = hit | (col == (ids[:, f:f + 1] + f * vocab_pad))
    onehot = hit.astype(compute_dtype)                                  # (TB, F*Vpad) bf16

    # Layer 1 (gather folded in): one MXU matmul, f32 accumulate, f32 bias + LeakyReLU.
    h = jnp.dot(onehot, wfold_ref[...],
                preferred_element_type=jnp.float32) + b1_ref[...]       # (TB, Hpad) f32
    h = jnp.where(h > 0, h, 0.01 * h)

    # Layer 2: Linear (bf16 operands, f32 accumulate).
    out = jnp.dot(h.astype(w2_ref.dtype), w2_ref[...],
                  preferred_element_type=jnp.float32) + b2_ref[...]     # (TB, Epad) f32
    o_ref[...] = out.astype(o_ref.dtype)


# ---------------------------------------------------------------------------
# Wrapper: fold/pad parameters, tile the batch, call the kernel
# ---------------------------------------------------------------------------
def mamo_embedding_table_forward(field_ids, emb_tables, w1, b1, w2, b2,
                                 *, tile_b=256, compute_dtype=jnp.bfloat16):
    """field_ids: (fieldNum, B) int; emb_tables: list of (vocab_f, embSize);
    w1: (allDim, hidden), b1: (hidden,), w2: (hidden, embSize), b2: (embSize,).
    Returns (B, embSize) float32."""
    field_num = len(emb_tables)
    emb = emb_tables[0].shape[1]
    B = field_ids.shape[1]
    all_dim, hidden = w1.shape
    emb_out = w2.shape[1]
    assert all_dim == field_num * emb
    assert w2.shape[0] == hidden
    assert all(t.shape[1] == emb for t in emb_tables)

    # Pad hidden and emb_out to lane-dense multiples of 128 (mathematically identical).
    hidden_pad = _round_up(hidden, 128)
    emb_pad = _round_up(emb_out, 128)

    # Fold the per-field tables into layer-1: W_fold = blockdiag(tables) @ W1.
    # Vocab rounded to 64 so F*Vpad is sublane/lane aligned (256 here = one MXU K-pass
    # on v6e/v7x).  Fold computed in f32, then cast to bf16 for the MXU.
    vocab_pad = _round_up(max(int(t.shape[0]) for t in emb_tables), 64)
    wfold = jnp.zeros((field_num * vocab_pad, hidden_pad), jnp.float32)
    for f, t in enumerate(emb_tables):
        blk = t.astype(jnp.float32) @ w1[f * emb:(f + 1) * emb, :].astype(jnp.float32)
        wfold = wfold.at[f * vocab_pad:f * vocab_pad + t.shape[0], :hidden].set(blk)
    wfold = wfold.astype(compute_dtype)

    b1p = jnp.zeros((1, hidden_pad), jnp.float32).at[:, :hidden].set(
        b1.reshape(1, hidden).astype(jnp.float32))
    w2p = jnp.zeros((hidden_pad, emb_pad), compute_dtype).at[:hidden, :emb_out].set(
        w2.astype(compute_dtype))
    b2p = jnp.zeros((1, emb_pad), jnp.float32).at[:, :emb_out].set(
        b2.reshape(1, emb_out).astype(jnp.float32))

    # Pad batch to a multiple of the tile; ids transposed so batch maps to the
    # sublane axis of the block (padding rows use id 0, output rows discarded).
    B_pad = _round_up(max(B, tile_b), tile_b)
    ids = jnp.zeros((B_pad, field_num), jnp.int32).at[:B, :].set(
        field_ids.T.astype(jnp.int32))

    out = pl.pallas_call(
        _mamo_fused_kernel,
        out_shape=jax.ShapeDtypeStruct((B_pad, emb_pad), jnp.float32),
        grid_spec=pltpu.PrefetchScalarGridSpec(
            num_scalar_prefetch=0,
            grid=(B_pad // tile_b,),
            in_specs=[
                pl.BlockSpec((tile_b, field_num), lambda i: (i, 0)),
                pl.BlockSpec((field_num * vocab_pad, hidden_pad), lambda i: (0, 0)),
                pl.BlockSpec((1, hidden_pad), lambda i: (0, 0)),
                pl.BlockSpec((hidden_pad, emb_pad), lambda i: (0, 0)),
                pl.BlockSpec((1, emb_pad), lambda i: (0, 0)),
            ],
            out_specs=pl.BlockSpec((tile_b, emb_pad), lambda i: (i, 0)),
        ),
        compiler_params=pltpu.CompilerParams(
            dimension_semantics=("parallel",)),
    )(ids, wfold, b1p, w2p, b2p)
    return out[:B, :emb_out]


# ---------------------------------------------------------------------------
if __name__ == "__main__":
    # Small, self-consistent configuration.
    embedding_size = 32
    field_num = 4
    all_dim = field_num * embedding_size          # getAllDim() = 128
    hidden = all_dim // 2                         # 64 (padded to 128 inside wrapper)
    vocab = 50
    batch = 512
    tile_b = 256                                  # 2 grid steps -> both v7x TCs busy
                                                  # (use tile_b=batch on 1-TC v5e/v6e)

    key = jax.random.PRNGKey(0)
    keys = jax.random.split(key, 8)

    # Deterministic synthetic parameters (no checkpoint load).
    emb_tables = [
        0.1 * jax.random.normal(keys[f], (vocab, embedding_size), dtype=jnp.float32)
        for f in range(field_num)
    ]
    # Linear weights stored pre-transposed: (in_features, out_features).
    w1 = 0.05 * jax.random.normal(keys[4], (all_dim, hidden), dtype=jnp.float32)
    b1 = 0.01 * jax.random.normal(keys[5], (hidden,), dtype=jnp.float32)
    w2 = 0.05 * jax.random.normal(keys[6], (hidden, embedding_size), dtype=jnp.float32)
    b2 = 0.01 * jax.random.normal(keys[7], (embedding_size,), dtype=jnp.float32)

    # Synthetic "interaction": one id per field per batch element.
    field_ids = jax.random.randint(
        jax.random.PRNGKey(42), (field_num, batch), 0, vocab, dtype=jnp.int32
    )

    out = mamo_embedding_table_forward(field_ids, emb_tables, w1, b1, w2, b2,
                                       tile_b=tile_b)
    out = jax.block_until_ready(out)

    # Pure-JAX reference mirroring the kernel's folded-weight bf16 rounding
    # (f32 accumulation), so the tolerance stays tight and meaningful.
    def q(a):
        return a.astype(jnp.bfloat16).astype(jnp.float32)

    h_ref = jnp.zeros((batch, hidden), jnp.float32)
    for f in range(field_num):
        blk = q(emb_tables[f] @ w1[f * embedding_size:(f + 1) * embedding_size, :])
        h_ref = h_ref + jnp.take(blk, field_ids[f], axis=0)
    h_ref = h_ref + b1
    h_ref = jnp.where(h_ref > 0, h_ref, 0.01 * h_ref)
    ref = q(h_ref) @ q(w2) + b2

    assert out.shape == (batch, embedding_size)
    max_err = float(jnp.max(jnp.abs(out - ref)))
    assert jnp.allclose(out, ref, atol=5e-4, rtol=1e-2), max_err

    # Loose sanity check against the plain f32 torch-style math (gather+concat+MLP),
    # to confirm the folded formulation preserves the module's semantics.
    x_f32 = jnp.concatenate(
        [jnp.take(t, ids_f, axis=0) for t, ids_f in zip(emb_tables, field_ids)], axis=-1)
    h_f32 = x_f32 @ w1 + b1
    h_f32 = jnp.where(h_f32 > 0, h_f32, 0.01 * h_f32)
    ref_f32 = h_f32 @ w2 + b2
    assert jnp.allclose(out, ref_f32, atol=3e-3, rtol=5e-2)

    print("KERNEL_OK")
</pallas_src>

<mosaic_0001>
module attributes {stable_mosaic.version = 11 : i64} {
  func.func @_mamo_fused_kernel(%arg0: i32, %arg1: memref<256x4xi32, #tpu.memory_space<vmem>>, %arg2: memref<256x128xbf16, #tpu.memory_space<vmem>>, %arg3: memref<1x128xf32, #tpu.memory_space<vmem>>, %arg4: memref<128x128xbf16, #tpu.memory_space<vmem>>, %arg5: memref<1x128xf32, #tpu.memory_space<vmem>>, %arg6: memref<256x128xf32, #tpu.memory_space<vmem>>) attributes {dimension_semantics = [#tpu.dimension_semantics<parallel>], iteration_bounds = array<i64: 2>, scalar_prefetch = 0 : i64, scratch_operands = 0 : i64, tpu.core_type = #tpu.core_type<tc>, window_params = [{transform_indices = @transform_0, window_bounds = array<i64: 256, 4>}, {pipeline_mode = #tpu.pipeline_mode<synchronous>, transform_indices = @transform_1, window_bounds = array<i64: 256, 128>}, {pipeline_mode = #tpu.pipeline_mode<synchronous>, transform_indices = @transform_2, window_bounds = array<i64: 1, 128>}, {pipeline_mode = #tpu.pipeline_mode<synchronous>, transform_indices = @transform_3, window_bounds = array<i64: 128, 128>}, {pipeline_mode = #tpu.pipeline_mode<synchronous>, transform_indices = @transform_4, window_bounds = array<i64: 1, 128>}, {transform_indices = @transform_5, window_bounds = array<i64: 256, 128>}]} {
    %c0 = arith.constant 0 : index
    %c0_0 = arith.constant 0 : index
    %0 = vector.load %arg1[%c0, %c0_0] : memref<256x4xi32, #tpu.memory_space<vmem>>, vector<256x4xi32>
    %1 = tpu.iota {dimensions = array<i32: 1>} : vector<256x256xi32>
    %2 = vector.extract_strided_slice %0 {offsets = [0, 0], sizes = [256, 1], strides = [1, 1]} : vector<256x4xi32> to vector<256x1xi32>
    %3 = vector.broadcast %2 : vector<256x1xi32> to vector<256x256xi32>
    %4 = arith.cmpi eq, %1, %3 : vector<256x256xi32>
    %5 = vector.extract_strided_slice %0 {offsets = [0, 1], sizes = [256, 1], strides = [1, 1]} : vector<256x4xi32> to vector<256x1xi32>
    %c64_i32 = arith.constant 64 : i32
    %6 = vector.broadcast %c64_i32 : i32 to vector<256x1xi32>
    %7 = arith.addi %5, %6 : vector<256x1xi32>
    %8 = vector.broadcast %7 : vector<256x1xi32> to vector<256x256xi32>
    %9 = arith.cmpi eq, %1, %8 : vector<256x256xi32>
    %10 = arith.ori %4, %9 : vector<256x256xi1>
    %11 = vector.extract_strided_slice %0 {offsets = [0, 2], sizes = [256, 1], strides = [1, 1]} : vector<256x4xi32> to vector<256x1xi32>
    %c128_i32 = arith.constant 128 : i32
    %12 = vector.broadcast %c128_i32 : i32 to vector<256x1xi32>
    %13 = arith.addi %11, %12 : vector<256x1xi32>
    %14 = vector.broadcast %13 : vector<256x1xi32> to vector<256x256xi32>
    %15 = arith.cmpi eq, %1, %14 : vector<256x256xi32>
    %16 = arith.ori %10, %15 : vector<256x256xi1>
    %17 = vector.extract_strided_slice %0 {offsets = [0, 3], sizes = [256, 1], strides = [1, 1]} : vector<256x4xi32> to vector<256x1xi32>
    %c192_i32 = arith.constant 192 : i32
    %18 = vector.broadcast %c192_i32 : i32 to vector<256x1xi32>
    %19 = arith.addi %17, %18 : vector<256x1xi32>
    %20 = vector.broadcast %19 : vector<256x1xi32> to vector<256x256xi32>
    %21 = arith.cmpi eq, %1, %20 : vector<256x256xi32>
    %22 = arith.ori %16, %21 : vector<256x256xi1>
    %23 = arith.extui %22 : vector<256x256xi1> to vector<256x256xi32>
    %24 = arith.sitofp %23 : vector<256x256xi32> to vector<256x256xf32>
    %25 = arith.truncf %24 : vector<256x256xf32> to vector<256x256xbf16>
    %c0_1 = arith.constant 0 : index
    %c0_2 = arith.constant 0 : index
    %26 = vector.load %arg2[%c0_1, %c0_2] : memref<256x128xbf16, #tpu.memory_space<vmem>>, vector<256x128xbf16>
    %cst = arith.constant dense<0.000000e+00> : vector<256x128xf32>
    %27 = tpu.matmul %25, %26, %cst {dimension_numbers = #tpu.dot_dimension_numbers<[1], [0], [0], [1], [0, 0, 1, 1], [], []>} : vector<256x256xbf16>, vector<256x128xbf16>, vector<256x128xf32> -> vector<256x128xf32>
    %c0_3 = arith.constant 0 : index
    %c0_4 = arith.constant 0 : index
    %28 = vector.load %arg3[%c0_3, %c0_4] : memref<1x128xf32, #tpu.memory_space<vmem>>, vector<1x128xf32>
    %29 = vector.broadcast %28 : vector<1x128xf32> to vector<256x128xf32>
    %30 = arith.addf %27, %29 : vector<256x128xf32>
    %cst_5 = arith.constant 0.000000e+00 : f32
    %31 = vector.broadcast %cst_5 : f32 to vector<256x128xf32>
    %32 = arith.cmpf ogt, %30, %31 : vector<256x128xf32>
    %cst_6 = arith.constant 0.00999999977 : f32
    %33 = vector.broadcast %cst_6 : f32 to vector<256x128xf32>
    %34 = arith.mulf %33, %30 : vector<256x128xf32>
    %35 = arith.select %32, %30, %34 : vector<256x128xi1>, vector<256x128xf32>
    %36 = arith.truncf %35 : vector<256x128xf32> to vector<256x128xbf16>
    %c0_7 = arith.constant 0 : index
    %c0_8 = arith.constant 0 : index
    %37 = vector.load %arg4[%c0_7, %c0_8] : memref<128x128xbf16, #tpu.memory_space<vmem>>, vector<128x128xbf16>
    %cst_9 = arith.constant dense<0.000000e+00> : vector<256x128xf32>
    %38 = tpu.matmul %36, %37, %cst_9 {dimension_numbers = #tpu.dot_dimension_numbers<[1], [0], [0], [1], [0, 0, 1, 1], [], []>} : vector<256x128xbf16>, vector<128x128xbf16>, vector<256x128xf32> -> vector<256x128xf32>
    %c0_10 = arith.constant 0 : index
    %c0_11 = arith.constant 0 : index
    %39 = vector.load %arg5[%c0_10, %c0_11] : memref<1x128xf32, #tpu.memory_space<vmem>>, vector<1x128xf32>
    %40 = vector.broadcast %39 : vector<1x128xf32> to vector<256x128xf32>
    %41 = arith.addf %38, %40 : vector<256x128xf32>
    %c0_12 = arith.constant 0 : index
    %c0_13 = arith.constant 0 : index
    %42 = vector.load %arg6[%c0_12, %c0_13] : memref<256x128xf32, #tpu.memory_space<vmem>>, vector<256x128xf32>
    tpu.vector_store %arg6[%c0_12, %c0_13], %41 {strides = array<i32>} : memref<256x128xf32, #tpu.memory_space<vmem>>, vector<256x128xf32>,
    return
  }
  func.func @transform_0(%arg0: i32) -> (i32, i32) {
    %c0_i32 = arith.constant 0 : i32
    %c0_i32_0 = arith.constant 0 : i32
    return %arg0, %c0_i32 : i32, i32
  }
  func.func @transform_1(%arg0: i32) -> (i32, i32) {
    %c0_i32 = arith.constant 0 : i32
    %c0_i32_0 = arith.constant 0 : i32
    %c0_i32_1 = arith.constant 0 : i32
    return %c0_i32, %c0_i32_0 : i32, i32
  }
  func.func @transform_2(%arg0: i32) -> (i32, i32) {
    %c0_i32 = arith.constant 0 : i32
    %c0_i32_0 = arith.constant 0 : i32
    %c0_i32_1 = arith.constant 0 : i32
    return %c0_i32, %c0_i32_0 : i32, i32
  }
  func.func @transform_3(%arg0: i32) -> (i32, i32) {
    %c0_i32 = arith.constant 0 : i32
    %c0_i32_0 = arith.constant 0 : i32
    %c0_i32_1 = arith.constant 0 : i32
    return %c0_i32, %c0_i32_0 : i32, i32
  }
  func.func @transform_4(%arg0: i32) -> (i32, i32) {
    %c0_i32 = arith.constant 0 : i32
    %c0_i32_0 = arith.constant 0 : i32
    %c0_i32_1 = arith.constant 0 : i32
    return %c0_i32, %c0_i32_0 : i32, i32
  }
  func.func @transform_5(%arg0: i32) -> (i32, i32) {
    %c0_i32 = arith.constant 0 : i32
    %c0_i32_0 = arith.constant 0 : i32
    return %arg0, %c0_i32 : i32, i32
  }
}

</mosaic_0001>

<bundles_post_ra>
// kernel: tpu_custom_call.1
= control target key start
LH: loop header
LB: loop body
LE: loop exit
PB: predicated region body
PF: predicated region fallthrough
CT: control target
= control target key end

     0   :  { %10 = vsyncpa [#allocation3], 0  ;;  %s4265_s0 = inlined_call_operand.vmem [shape: s32[512,4], index: 0, kind: input, shape index: {}]   ;;  %s4266_s1 = inlined_call_operand.vmem [shape: bf16[256,128], index: 1, kind: input, shape index: {}]   ;;  %s4267_s2 = inlined_call_operand.vmem [shape: f32[1,128], index: 2, kind: input, shape index: {}]   ;;  %s4268_s3 = inlined_call_operand.vmem [shape: bf16[128,128], index: 3, kind: input, shape index: {}]   ;;  %s4269_s4 = inlined_call_operand.vmem [shape: f32[1,128], index: 4, kind: input, shape index: {}]   ;;  %s4270_s5 = inlined_call_operand.hbm [shape: f32[512,128], index: 5, kind: output, shape index: {}]  }
   0x1   :  { %12 = vsyncpa [#allocation3 + $0x1], 0  ;;  %s2703_s18 = smov 0   ;;  %s2705_s19 = smov 0  }
   0x2   :  { %s2707_s20 = smov 0   ;;  %s2709_s21 = smov 0  }
   0x3 LB: > { %s2724_s22 = sadd.s32 4294967295, %s2663_s21   ;;  %s2098_s23 = sadd.s32 4294967294, %s2663_s21   ;;  %s2663_s21 = sphi %s2709_s21, %s4451_s21   ;;  %s2659_s20 = sphi %s2707_s20, %s4450_s20   ;;  %s2655_s19 = sphi %s2705_s19, %s4449_s19   ;;  %s2651_s18 = sphi %s2703_s18, %s4448_s18  }
   0x4   : > { %s2728_s24 = sadd.s32 1, %s2663_s21   ;;  %s135_s25 = sadd.s32 1, %s2659_s20 }
   0x5   : > { %s132_s26 = ssub.s32 %s2663_s21, %s2728_s24  ;;  %p145_p0 = scmp.ne.s32.totalorder %s2659_s20, %s2655_s19 }
   0x6   : > { %p133_p1 = scmp.eq.s32.totalorder %s132_s26, 0  ;;  %p146_p2 = scmp.eq.s32.totalorder %s2724_s22, 1 }
   0x7   : > { %p151_p3 = scmp.ne.s32.totalorder %s2655_s19, %s2651_s18  ;;  %p152_p4 = scmp.eq.s32.totalorder %s2098_s23, 1 }
   0x8   : > { %s2739_s27 = scalar_select %p133_p1, %s2659_s20, %s135_s25  }
   0x9   : > { %p2741_p5 = por %p146_p2, %p145_p0  ;;  %p2745_p6 = por %p152_p4, %p151_p3 }
   0xa   : > { %p2101_p7 = scmp.ge.s32.totalorder %s2663_s21, 1  ;;  %p191_p8 = scmp.lt.s32.totalorder %s2663_s21, 3 }
   0xc   : > { %p192_p9 = pnand %p2101_p7, %p191_p8 }
   0xd   : > { %s2103_s30 = sshll.u32 (!%p192_p9), %s2724_s22, 5  ;;  %v2665_v0 = vmov (!%p192_p9), 3   ;;  %v2666_v1 = vmov (!%p192_p9), 1   ;;  %v2667_v12 = vmov (!%p192_p9), 2   ;;  %v2668_v14 = vmov (!%p192_p9), 0   ;;  %v2574_v16 = vld [vmem:[%s4266_s1 + $0x40] sm:$0xff] (!%p192_p9)  }
   0xe   : > { %195 = sbr.rel (%p192_p9) target bundleno = 998 (0x3e6), region = 40  ;;  %2515 = vset.pattern.permute.xlu0 (!%p192_p9), %v2665_v0  ;;  %2511 = vset.pattern.permute.xlu1 (!%p192_p9), %v2666_v1  ;;  %p220_p10 = scmp.lt.s32.totalorder (!%p192_p9), %s2103_s30, 63  ;;  %v2575_v17 = vld [vmem:[%s4266_s1] sm:$0xff] (!%p192_p9)   ;;  %v2576_v19 = vld [vmem:[%s4266_s1 + $0x48] sm:$0xff] (!%p192_p9)   ;;  %v2578_v21 = vld [vmem:[%s4266_s1 + $0x50] sm:$0xff] (!%p192_p9)  }
   0xf   : > { %2265 = vmatprep.subr.bf16.mxu0 (!%p192_p9), %v2574_v16  ;;  %2449 = vmatprep.subr.bf16.mxu1 (!%p192_p9), %v2574_v16  ;;  %v2577_v20 = vld [vmem:[%s4266_s1 + $0x8] sm:$0xff] (!%p192_p9)   ;;  %v2579_v22 = vld [vmem:[%s4266_s1 + $0x10] sm:$0xff] (!%p192_p9)   ;;  %v2580_v24 = vld [vmem:[%s4266_s1 + $0x58] sm:$0xff] (!%p192_p9)   ;;  %s216_s13 = sand.u32 (!%p192_p9), 1, %s2655_s19   ;;  %s2264_s23 = sshll.u32 (!%p192_p9), %s2724_s22, 12 }
  0x10   : > { %2266 = vmatpush3.bf16.msra.mxu0 (!%p192_p9), %v2575_v17  ;;  %2457 = vmatpush3.bf16.msra.mxu1 (!%p192_p9), %v2575_v17  ;;  %v2581_v26 = vld [vmem:[%s4266_s1 + $0x18] sm:$0xff] (!%p192_p9)   ;;  %v2582_v28 = vld [vmem:[%s4266_s1 + $0x60] sm:$0xff] (!%p192_p9)   ;;  %v2584_v31 = vld [vmem:[%s4266_s1 + $0x68] sm:$0xff] (!%p192_p9)   ;;  %s2102_s14 = sshll.u32 (!%p192_p9), %s216_s13, 8  ;;  %s4224_s22 = scalar_lea.sflag (!%p192_p9), [#allocation3], %s216_s13 }
  0x11   : > { %2267 = vmatprep.subr.bf16.mxu0 (!%p192_p9), %v2576_v19  ;;  %2450 = vmatprep.subr.bf16.mxu1 (!%p192_p9), %v2576_v19  ;;  %v2583_v30 = vld [vmem:[%s4266_s1 + $0x20] sm:$0xff] (!%p192_p9)   ;;  %v2585_v34 = vld [vmem:[%s4266_s1 + $0x28] sm:$0xff] (!%p192_p9)   ;;  %v2586_v37 = vld [vmem:[%s4266_s1 + $0x70] sm:$0xff] (!%p192_p9)   ;;  %s4149_s17 = scalar_lea.vmem (!%p192_p9), [#allocation2], %s2102_s14  ;;  %s2670_s8 = smov (!%p192_p9), [#allocation2]  }
  0x12   : > { %v2587_v38 = vld [vmem:[%s4266_s1 + $0x30] sm:$0xff] (!%p192_p9)   ;;  %v2588_v40 = vld [vmem:[%s4266_s1 + $0x78] sm:$0xff] (!%p192_p9)   ;;  %s2036_s25 = sshll.u32 (!%p192_p9), %s4149_s17, 4  ;;  %s2605_s10 = sshll.u32 (!%p192_p9), %s2670_s8, 4  ;;  %s4216_s25 = int_to_ptr.vmem [resolvable:$true] %s2036_s25  ;;  %s2606_s10 = int_to_ptr.vmem [resolvable:$false] %s2605_s10 }
  0x13   : > { %v2589_v42 = vld [vmem:[%s4266_s1 + $0x38] sm:$0xff] (!%p192_p9)   ;;  %s2601_s7 = scalar_lea.vmem (!%p192_p9), %s4216_s25, 4096  ;;  %s2607_s11 = scalar_lea.vmem (!%p192_p9), %s2606_s10, 8192 }
  0x14   : > { %2268 = vmatpush3.bf16.msra.mxu0 (!%p192_p9), %v2577_v20  ;;  %2458 = vmatpush3.bf16.msra.mxu1 (!%p192_p9), %v2577_v20  ;;  %p2602_p11 = scmp.ne.s32.totalorder (!%p192_p9), %s4216_s25, %s2601_s7  ;;  %p2608_p0 = scmp.lt.s32.totalorder (!%p192_p9), %s4216_s25, %s2606_s10 }
  0x15   : > { %s4453_s30 = smov (!%p220_p10, %s2103_s30), 63  ;;  %2269 = vmatprep.subr.bf16.mxu0 %v2578_v21  ;;  %2451 = vmatprep.subr.bf16.mxu1 %v2578_v21  ;;  %p2609_p1 = scmp.lt.s32.totalorder %s2607_s11, %s2601_s7 }
  0x16   : > { %s2104_s6 = sshll.u32 %s4453_s30, 3  ;;  %p2603_p12 = pnand %p2602_p11, %p2741_p5 }
  0x17   : > { %s2757_s9 = scalar_lea.vmem %s4265_s0, %s2104_s6  ;;  %s4214_s6 = scalar_lea.hbm %s4270_s5, %s2264_s23 }
  0x18   : > { %v228_v2 = vld [vmem:[%s2757_s9 + $0x8] sm:$0xff]  ;;  %v2761_v3 = vld [vmem:[%s2757_s9] sm:$0xff]  ;;  %v2769_v9 = vld [vmem:[%s2757_s9 + $0x38] sm:$0xff]  ;;  %2270 = vmatpush3.bf16.msra.mxu0 %v2579_v22  ;;  %2459 = vmatpush3.bf16.msra.mxu1 %v2579_v22  ;;  %p2604_p13 = pneg %p2603_p12  ;;  %p2610_p2 = por %p2609_p1, %p2608_p0 }
  0x19   : > { %v2764_v4 = vld [vmem:[%s2757_s9 + $0x20] sm:$0xff]  ;;  %v935_v5 = vadd.s32 192, %v228_v2  ;;  %v422_v6 = vadd.s32 64, %v2761_v3  ;;  %v423_v8 = vadd.s32 64, %v228_v2  ;;  %v941_v10 = vadd.s32 192, %v2769_v9  ;;  %v2778_v15 = vld [vmem:[%s2757_s9 + $0x10] sm:$0xff]  ;;  %2271 = vmatprep.subr.bf16.mxu0 %v2580_v24  ;;  %2452 = vmatprep.subr.bf16.mxu1 %v2580_v24 }
  0x1a   : > { %v938_v7 = vadd.s32 192, %v2764_v4  ;;  %v679_v11 = vadd.s32 128, %v228_v2  ;;  %v934_v13 = vadd.s32 192, %v2761_v3  ;;  %v230_v18 = vld [vmem:[%s2757_s9 + $0x18] sm:$0xff]  ;;  %v2807_v25 = vld [vmem:[%s2757_s9 + $0x50] sm:$0xff]  ;;  %v680_v27 = vadd.s32 128, %v2778_v15  ;;  %p2611_p3 = pnand %p2610_p2, %p2604_p13 }
  0x1b   : > { %970 = vperm.xlu0 %2515, %v935_v5   ;;  %455 = vperm.xlu1 %2511, %v422_v6   ;;  %v425_v23 = vadd.s32 64, %v230_v18  ;;  %v2819_v29 = vld [vmem:[%s2757_s9 + $0x68] sm:$0xff]  ;;  %v2830_v32 = vld [vmem:[%s2757_s9 + $0x80] sm:$0xff]  ;;  %v936_v33 = vadd.s32 192, %v2778_v15  ;;  %v678_v35 = vadd.s32 128, %v2761_v3  ;;  %v937_v36 = vadd.s32 192, %v230_v18 }
  0x1c   : > { %2272 = vmatpush3.bf16.msra.mxu0 %v2581_v26  ;;  %2460 = vmatpush3.bf16.msra.mxu1 %v2581_v26  ;;  %v681_v39 = vadd.s32 128, %v230_v18  ;;  %v233_v41 = vld [vmem:[%s2757_s9 + $0x30] sm:$0xff]  ;;  %v232_v43 = vld [vmem:[%s2757_s9 + $0x28] sm:$0xff]  ;;  %v426_v46 = vadd.s32 64, %v2764_v4  ;;  %v2862_v48 = vld [vmem:[%s2757_s9 + $0x60] sm:$0xff]  ;;  %v682_v49 = vadd.s32 128, %v2764_v4 }
  0x1d   : > { %2273 = vmatprep.subr.bf16.mxu0 %v2582_v28  ;;  %2453 = vmatprep.subr.bf16.mxu1 %v2582_v28  ;;  %v684_v44 = vadd.s32 128, %v233_v41  ;;  %v2856_v45 = vld [vmem:[%s2757_s9 + $0x48] sm:$0xff]  ;;  %v690_v50 = vadd.s32 128, %v2862_v48  ;;  %v2867_v51 = vld [vmem:[%s2757_s9 + $0x78] sm:$0xff]  ;;  %v683_v52 = vadd.s32 128, %v232_v43  ;;  %v2872_v54 = vld [vmem:[%s2757_s9 + $0x90] sm:$0xff] }
  0x1e   : > { %v687_v47 = vadd.s32 128, %v2856_v45  ;;  %v693_v53 = vadd.s32 128, %v2867_v51  ;;  %v696_v55 = vadd.s32 128, %v2872_v54  ;;  %v939_v56 = vadd.s32 192, %v232_v43  ;;  %v2876_v57 = vld [vmem:[%s2757_s9 + $0xa0] sm:$0xff]  ;;  %v2881_v59 = vld [vmem:[%s2757_s9 + $0xc8] sm:$0xff] }
  0x1f   : > { %979 = vperm.xlu0 %2515, %v938_v7   ;;  %458 = vperm.xlu1 %2511, %v423_v8   ;;  %v698_v58 = vadd.s32 128, %v2876_v57  ;;  %v703_v60 = vadd.s32 128, %v2881_v59  ;;  %v2886_v61 = vld [vmem:[%s2757_s9 + $0xb0] sm:$0xff]  ;;  %v428_v62 = vadd.s32 64, %v233_v41  ;;  %v685_v5 = vadd.s32 128, %v2769_v9  ;;  %v2915_v20 = vld [vmem:[%s2757_s9 + $0xa8] sm:$0xff] }
  0x20   : > { %2274 = vmatpush3.bf16.msra.mxu0 %v2583_v30  ;;  %2461 = vmatpush3.bf16.msra.mxu1 %v2583_v30  ;;  %v700_v63 = vadd.s32 128, %v2886_v61  ;;  %v424_v6 = vadd.s32 64, %v2778_v15  ;;  %v940_v7 = vadd.s32 192, %v233_v41  ;;  %v427_v8 = vadd.s32 64, %v232_v43 }
  0x21   : > { %2275 = vmatprep.subr.bf16.mxu0 %v2584_v31  ;;  %2454 = vmatprep.subr.bf16.mxu1 %v2584_v31  ;;  %v431_v17 = vadd.s32 64, %v2856_v45  ;;  %v443_v22 = vadd.s32 64, %v2915_v20  ;;  %v943_v28 = vadd.s32 192, %v2856_v45  ;;  %v944_v31 = vadd.s32 192, %v2807_v25 }
  0x23   : > { %988 = vperm.xlu0 %2515, %v941_v10   ;;  %2512 = vset.pattern.permute.xlu1 %v2667_v12  ;;  %v235_v10 = vld [vmem:[%s2757_s9 + $0x40] sm:$0xff] }
  0x24   : > { %714 = vperm.xlu1 %2512, %v679_v11   ;;  %2276 = vmatpush3.bf16.msra.mxu0 %v2585_v34  ;;  %v430_v11 = vadd.s32 64, %v235_v10  ;;  %v686_v21 = vadd.s32 128, %v235_v10  ;;  %v942_v24 = vadd.s32 192, %v235_v10 }
  0x25   : > { %2462 = vmatpush3.bf16.msra.mxu1 %v2585_v34  ;;  %2277 = vmatprep.subr.bf16.mxu0 %v2586_v37  ;;  %v947_v34 = vadd.s32 192, %v2819_v29 }
  0x26   : > { %2455 = vmatprep.subr.bf16.mxu1 %v2586_v37  ;;  %v688_v37 = vadd.s32 128, %v2807_v25 }
  0x27   : > { %2527 = vset.pattern.permute.xlu0 %v2668_v14 }
  0x28   : > { %263 = vperm.xlu0 %2527, %v2761_v3   ;;  %2513 = vset.pattern.permute.xlu1 %v2665_v0  ;;  %v429_v3 = vadd.s32 64, %v2769_v9 }
  0x29   : > { %967 = vperm.xlu1 %2513, %v934_v13   ;;  %2278 = vmatpush3.bf16.msra.mxu0 %v2587_v38 }
  0x2a   : > { %2463 = vmatpush3.bf16.msra.mxu1 %v2587_v38  ;;  %2279 = vmatprep.subr.bf16.mxu0 %v2588_v40  ;;  %v950_v38 = vadd.s32 192, %v2830_v32 }
  0x2b   : > { %2456 = vmatprep.subr.bf16.mxu1 %v2588_v40 }
  0x2c   : > { %266 = vperm.xlu0 %2527, %v228_v2   ;;  %v2891_v2 = vld [vmem:[%s2757_s9 + $0xd8] sm:$0xff] }
  0x2d   : > { %2514 = vset.pattern.permute.xlu1 %v2668_v14  ;;  %2280 = vmatpush3.bf16.msra.mxu0 %v2589_v42 }
  0x2e   : > { %269 = vperm.xlu1 %2514, %v2778_v15   ;;  %2464 = vmatpush3.bf16.msra.mxu1 %v2589_v42  ;;  %v2904_v15 = vld [vmem:[%s2757_s9 + $0x70] sm:$0xff] }
  0x2f   : > { %v436_v16 = vadd.s32 64, %v2904_v15 }
  0x30   : > { %275 = vperm.xlu0 %2527, %v2764_v4   ;;  %v705_v4 = vadd.s32 128, %v2891_v2 }
  0x32   : > { %272 = vperm.xlu1 %2514, %v230_v18   ;;  %v2910_v18 = vld [vmem:[%s2757_s9 + $0x88] sm:$0xff] }
  0x33   : > { %v439_v19 = vadd.s32 64, %v2910_v18 }
  0x34   : > { %284 = vperm.xlu0 %2527, %v2769_v9   ;;  %v238_v9 = vld [vmem:[%s2757_s9 + $0x58] sm:$0xff] }
  0x35   : > { %v433_v13 = vadd.s32 64, %v238_v9  ;;  %v689_v42 = vadd.s32 128, %v238_v9 }
  0x36   : > { %2516 = vset.pattern.permute.xlu1 %v2666_v1 }
  0x37   : > { %464 = vperm.xlu1 %2516, %v425_v23   ;;  %v2920_v23 = vld [vmem:[%s2757_s9 + $0xb8] sm:$0xff] }
  0x38   : > { %293 = vperm.xlu0 %2527, %v2807_v25   ;;  %v445_v26 = vadd.s32 64, %v2920_v23 }
  0x3b   : > { %2517 = vset.pattern.permute.xlu1 %v2667_v12 }
  0x3c   : > { %302 = vperm.xlu0 %2527, %v2819_v29   ;;  %717 = vperm.xlu1 %2517, %v680_v27   ;;  %v2924_v27 = vld [vmem:[%s2757_s9 + $0xe8] sm:$0xff] }
  0x3d   : > { %v451_v30 = vadd.s32 64, %v2924_v27 }
  0x40   : > { %311 = vperm.xlu0 %2527, %v2830_v32   ;;  %2518 = vset.pattern.permute.xlu1 %v2665_v0 }
  0x41   : > { %973 = vperm.xlu1 %2518, %v936_v33   ;;  %v432_v33 = vadd.s32 64, %v2807_v25 }
  0x44   : > { %2544 = vset.pattern.permute.xlu0 %v2667_v12 }
  0x45   : > { %711 = vperm.xlu0 %2544, %v678_v35   ;;  %976 = vperm.xlu1 %2518, %v937_v36  }
  0x49   : > { %720 = vperm.xlu0 %2544, %v681_v39   ;;  %2519 = vset.pattern.permute.xlu1 %v2668_v14  ;;  %v2942_v39 = vld [vmem:[%s2757_s9 + $0x98] sm:$0xff] }
  0x4a   : > { %278 = vperm.xlu1 %2519, %v232_v43   ;;  %v953_v43 = vadd.s32 192, %v2942_v39 }
  0x4d   : > { %729 = vperm.xlu0 %2544, %v684_v44  }
  0x4e   : > { %2520 = vset.pattern.permute.xlu1 %v2666_v1 }
  0x4f   : > { %467 = vperm.xlu1 %2520, %v426_v46   ;;  %v945_v46 = vadd.s32 192, %v238_v9 }
  0x51   : > { %738 = vperm.xlu0 %2544, %v687_v47  }
  0x53   : > { %2521 = vset.pattern.permute.xlu1 %v2667_v12 }
  0x54   : > { %723 = vperm.xlu1 %2521, %v682_v49  }
  0x55   : > { %747 = vperm.xlu0 %2544, %v690_v50   ;;  %v957_v50 = vadd.s32 192, %v2920_v23 }
  0x58   : > { %726 = vperm.xlu1 %2521, %v683_v52   ;;  %v2960_v52 = vld [vmem:[%s2757_s9 + $0xe0] sm:$0xff] }
  0x59   : > { %756 = vperm.xlu0 %2544, %v693_v53  }
  0x5c   : > { %2522 = vset.pattern.permute.xlu1 %v2665_v0 }
  0x5d   : > { %765 = vperm.xlu0 %2544, %v696_v55   ;;  %982 = vperm.xlu1 %2522, %v939_v56   ;;  %v962_v55 = vadd.s32 192, %v2960_v52 }
  0x61   : > { %771 = vperm.xlu0 %2544, %v698_v58   ;;  %2523 = vset.pattern.permute.xlu1 %v2668_v14 }
  0x62   : > { %281 = vperm.xlu1 %2523, %v233_v41  }
  0x65   : > { %786 = vperm.xlu0 %2544, %v703_v60   ;;  %v434_v60 = vadd.s32 64, %v2862_v48 }
  0x66   : > { %2524 = vset.pattern.permute.xlu1 %v2666_v1 }
  0x67   : > { %473 = vperm.xlu1 %2524, %v428_v62  }
  0x69   : > { %777 = vperm.xlu0 %2544, %v700_v63  }
  0x6b   : > { %476 = vperm.xlu1 %2524, %v429_v3   ;;  %v435_v3 = vadd.s32 64, %v2819_v29 }
  0x6d   : > { %792 = vperm.xlu0 %2544, %v705_v4  }
  0x6f   : > { %2525 = vset.pattern.permute.xlu1 %v2667_v12 }
  0x70   : > { %732 = vperm.xlu1 %2525, %v685_v5   ;;  %v259_v5 = vlaneseq }
  0x71   : > { %2560 = vset.pattern.permute.xlu0 %v2666_v1 }
  0x72   : > { %461 = vperm.xlu0 %2560, %v424_v6  }
  0x74   : > { %2526 = vset.pattern.permute.xlu1 %v2665_v0 }
  0x75   : > { %985 = vperm.xlu1 %2526, %v940_v7   ;;  %v691_v7 = vadd.s32 128, %v2819_v29 }
  0x76   : > { %470 = vperm.xlu0 %2560, %v427_v8   ;;  %v2984_v8 = vld [vmem:[%s2757_s9 + $0xc0] sm:$0xff] }
  0x79   : > { %2528 = vset.pattern.permute.xlu1 %v2668_v14 }
  0x7a   : > { %479 = vperm.xlu0 %2560, %v430_v11   ;;  %287 = vperm.xlu1 %2528, %v235_v10   ;;  %v2987_v10 = vand.u32 127, %v259_v5 }
  0x7e   : > { %290 = vperm.xlu1 %2528, %v2856_v45   ;;  %488 = vperm.xlu0 %2560, %v433_v13   ;;  %v955_v45 = vadd.s32 192, %v2915_v20  ;;  %v946_v13 = vadd.s32 192, %v2862_v48 }
  0x82   : > { %2529 = vset.pattern.permute.xlu1 %v2666_v1  ;;  %497 = vperm.xlu0 %2560, %v436_v16   ;;  %v2997_v16 = vadd.s32 128, %v2987_v10 }
  0x83   : > { %482 = vperm.xlu1 %2529, %v431_v17  }
  0x86   : > { %506 = vperm.xlu0 %2560, %v439_v19  }
  0x87   : > { %2530 = vset.pattern.permute.xlu1 %v2667_v12 }
  0x88   : > { %735 = vperm.xlu1 %2530, %v686_v21  }
  0x8a   : > { %518 = vperm.xlu0 %2560, %v443_v22   ;;  %v4295_v22 = vmov 0 }
  0x8c   : > { %2531 = vset.pattern.permute.xlu1 %v2665_v0 }
  0x8d   : > { %991 = vperm.xlu1 %2531, %v942_v24  }
  0x8e   : > { %524 = vperm.xlu0 %2560, %v445_v26  }
  0x91   : > { %994 = vperm.xlu1 %2531, %v943_v28   ;;  %v437_v28 = vadd.s32 64, %v2867_v51 }
  0x92   : > { %542 = vperm.xlu0 %2560, %v451_v30  }
  0x95   : > { %2532 = vset.pattern.permute.xlu1 %v2668_v14 }
  0x96   : > { %296 = vperm.xlu1 %2532, %v238_v9   ;;  %2564 = vset.pattern.permute.xlu0 %v2665_v0 }
  0x97   : > { %997 = vperm.xlu0 %2564, %v944_v31  }
  0x9a   : > { %2533 = vset.pattern.permute.xlu1 %v2666_v1  ;;  %v2935_v35 = vpop.permute.xlu1 %455  ;;  %v2937_v36 = vpop.permute.xlu0 %970 }
  0x9b   : > { %485 = vperm.xlu1 %2533, %v432_v33   ;;  %1006 = vperm.xlu0 %2564, %v947_v34   ;;  %vm550_vm2 = vcmp.eq.s32.totalorder %v2987_v10, %v2935_v35  ;;  %vm551_vm9 = vcmp.eq.s32.totalorder %v2997_v16, %v2935_v35  ;;  %v2669_v33 = vmov 1.0|1.0   ;;  %v692_v35 = vadd.s32 128, %v2904_v15 }
  0x9e   : > { %v2944_v40 = vpop.permute.xlu1 %458  ;;  %v2946_v41 = vpop.permute.xlu0 %979 }
  0x9f   : > { %2534 = vset.pattern.permute.xlu1 %v2667_v12  ;;  %1015 = vperm.xlu0 %2564, %v950_v38   ;;  %vm552_vm4 = vcmp.eq.s32.totalorder %v2987_v10, %v2944_v40  ;;  %vm553_vm7 = vcmp.eq.s32.totalorder %v2997_v16, %v2944_v40  ;;  %v948_v38 = vadd.s32 192, %v2904_v15 }
  0xa0   : > { %741 = vperm.xlu1 %2534, %v688_v37  }
  0xa2   : > { %v2950_v44 = vpop.permute.xlu0 %988 }
  0xa3   : > { %v2952_v25 = vpop.permute.xlu1 %714  ;;  %1024 = vperm.xlu0 %2564, %v953_v43  }
  0xa4   : > { %744 = vperm.xlu1 %2534, %v689_v42   ;;  %vm808_vm11 = vcmp.eq.s32.totalorder %v2987_v10, %v2952_v25  ;;  %v4277_v42 = vmov 0 }
  0xa7   : > { %v264_v47 = vpop.permute.xlu0 %263  ;;  %1030 = vperm.xlu0 %2564, %v955_v45  }
  0xa8   : > { %2535 = vset.pattern.permute.xlu1 %v2665_v0  ;;  %v2956_v49 = vpop.permute.xlu1 %967  ;;  %vm358_vm0 = vcmp.eq.s32.totalorder %v2987_v10, %v264_v47  ;;  %vm359_vm5 = vcmp.eq.s32.totalorder %v2997_v16, %v264_v47 }
  0xa9   : > { %1000 = vperm.xlu1 %2535, %v945_v46   ;;  %vm3013_vm6 = vmor %vm358_vm0, %vm550_vm2  ;;  %vm809_vm0 = vcmp.eq.s32.totalorder %v2997_v16, %v2952_v25  ;;  %v4279_v25 = vmov 0 }
  0xaa   : > { %vm615_vm12 = vmor %vm359_vm5, %vm551_vm9  ;;  %vm1064_vm5 = vcmp.eq.s32.totalorder %v2987_v10, %v2937_v36  ;;  %vm1062_vm9 = vcmp.eq.s32.totalorder %v2987_v10, %v2956_v49 }
  0xab   : > { %v267_v53 = vpop.permute.xlu0 %266  ;;  %1036 = vperm.xlu0 %2564, %v957_v50  }
  0xac   : > { %vm360_vm1 = vcmp.eq.s32.totalorder %v2987_v10, %v267_v53  ;;  %vm361_vm3 = vcmp.eq.s32.totalorder %v2997_v16, %v267_v53 }
  0xad   : > { %2536 = vset.pattern.permute.xlu1 %v2668_v14  ;;  %v2964_v56 = vpop.permute.xlu1 %269  ;;  %vm616_vm8 = vmor %vm360_vm1, %vm552_vm4  ;;  %vm1065_vm1 = vcmp.eq.s32.totalorder %v2997_v16, %v2937_v36 }
  0xae   : > { %299 = vperm.xlu1 %2536, %v2862_v48   ;;  %vm617_vm10 = vmor %vm361_vm3, %vm553_vm7  ;;  %vm1063_vm7 = vcmp.eq.s32.totalorder %v2997_v16, %v2956_v49  ;;  %v438_v49 = vadd.s32 64, %v2830_v32  ;;  %v4289_v48 = vmov 0 }
  0xaf   : > { %v2967_v58 = vpop.permute.xlu0 %275  ;;  %1051 = vperm.xlu0 %2564, %v962_v55   ;;  %vm3027_vm14 = vmor %vm616_vm8, %vm808_vm11  ;;  %v694_v55 = vadd.s32 128, %v2830_v32 }
  0xb0   : > { %vm873_vm2 = vmor %vm617_vm10, %vm809_vm0 }
  0xb1   : > { %v2970_v62 = vpop.permute.xlu1 %272  ;;  %vm1129_vm8 = vmor %vm873_vm2, %vm1065_vm1 }
  0xb2   : > { %2537 = vset.pattern.permute.xlu1 %v2666_v1 }
  0xb3   : > { %491 = vperm.xlu1 %2537, %v434_v60   ;;  %v2973_v63 = vpop.permute.xlu0 %284  ;;  %2566 = vset.pattern.permute.xlu0 %v2668_v14 }
  0xb4   : > { %320 = vperm.xlu0 %2566, %v2942_v39  }
  0xb6   : > { %v2978_v4 = vpop.permute.xlu1 %464 }
  0xb7   : > { %494 = vperm.xlu1 %2537, %v435_v3   ;;  %v2980_v6 = vpop.permute.xlu0 %293  ;;  %v695_v3 = vadd.s32 128, %v2910_v18 }
  0xb8   : > { %335 = vperm.xlu0 %2566, %v2984_v8  }
  0xbb   : > { %2538 = vset.pattern.permute.xlu1 %v2667_v12  ;;  %v2990_v11 = vpop.permute.xlu1 %717  ;;  %v2992_v9 = vpop.permute.xlu0 %302 }
  0xbc   : > { %750 = vperm.xlu1 %2538, %v691_v7   ;;  %329 = vperm.xlu0 %2566, %v2886_v61   ;;  %v951_v7 = vadd.s32 192, %v2910_v18 }
  0xbf   : > { %v3000_v29 = vpop.permute.xlu0 %311 }
  0xc0   : > { %2539 = vset.pattern.permute.xlu1 %v2665_v0  ;;  %v3004_v17 = vpop.permute.xlu1 %973  ;;  %344 = vperm.xlu0 %2566, %v2891_v2  }
  0xc1   : > { %1003 = vperm.xlu1 %2539, %v946_v13  }
  0xc4   : > { %v712_v19 = vpop.permute.xlu0 %711  ;;  %v3021_v21 = vpop.permute.xlu1 %976  ;;  %347 = vperm.xlu0 %2566, %v2960_v52  }
  0xc5   : > { %vm807_vm13 = vcmp.eq.s32.totalorder %v2997_v16, %v712_v19  ;;  %2540 = vset.pattern.permute.xlu1 %v2668_v14  ;;  %vm806_vm15 = vcmp.eq.s32.totalorder %v2987_v10, %v712_v19 }
  0xc6   : > { %305 = vperm.xlu1 %2540, %v2904_v15   ;;  %vm871_vm3 = vmor %vm615_vm12, %vm807_vm13 }
  0xc7   : > { %vm870_vm4 = vmor %vm3013_vm6, %vm806_vm15  ;;  %vm366_vm15 = vcmp.eq.s32.totalorder %v2987_v10, %v2967_v58 }
  0xc8   : > { %v3038_v24 = vpop.permute.xlu0 %720  ;;  %vm1127_vm10 = vmor %vm871_vm3, %vm1063_vm7  ;;  %vm1071_vm3 = vcmp.eq.s32.totalorder %v2997_v16, %v2946_v41 }
  0xc9   : > { %v3042_v26 = vpop.permute.xlu1 %278  ;;  %vm1126_vm11 = vmor %vm870_vm4, %vm1062_vm9 }
  0xca   : > { %308 = vperm.xlu1 %2540, %v2867_v51   ;;  %vm1128_vm6 = vmor %vm3027_vm14, %vm1064_vm5  ;;  %vm367_vm14 = vcmp.eq.s32.totalorder %v2997_v16, %v2967_v58 }
  0xcb   : > { %vm2186_vm12 = vmpackc.low %vm1129_vm8, %vm1127_vm10  ;;  %vm1070_vm8 = vcmp.eq.s32.totalorder %v2987_v10, %v2946_v41  ;;  %v949_v41 = vadd.s32 192, %v2867_v51 }
  0xcc   : > { %v3052_v30 = vpop.permute.xlu0 %729  ;;  %2187 = vmatprep.mubr.msk.bf16.mxu0 %vm2186_vm12, %v2669_v33  ;;  %vm2188_vm13 = vmpackc.low %vm1128_vm6, %vm1126_vm11  ;;  %vm557_vm12 = vcmp.eq.s32.totalorder %v2997_v16, %v2978_v4 }
  0xcd   : > { %2189 = vmatmul.mubr.msk.bf16.vlgmr.msra.gmra.mrb[0].mxu0 %vm2188_vm13, %v2669_v33  ;;  %vm813_vm13 = vcmp.eq.s32.totalorder %v2997_v16, %v3038_v24 }
  0xce   : > { %2541 = vset.pattern.permute.xlu1 %v2666_v1  ;;  %v468_v31 = vpop.permute.xlu1 %467 }
  0xcf   : > { %500 = vperm.xlu1 %2541, %v437_v28   ;;  %vm558_vm0 = vcmp.eq.s32.totalorder %v2987_v10, %v468_v31  ;;  %vm559_vm1 = vcmp.eq.s32.totalorder %v2997_v16, %v468_v31  ;;  %v3207_v28 = vld [vmem:[%s2757_s9 + $0xf8] sm:$0xff]  ;;  %v446_v31 = vadd.s32 64, %v2984_v8 }
  0xd0   : > { %v3062_v34 = vpop.permute.xlu0 %738  ;;  %vm622_vm2 = vmor %vm366_vm15, %vm558_vm0  ;;  %vm365_vm15 = vcmp.eq.s32.totalorder %v2997_v16, %v2970_v62  ;;  %vm556_vm0 = vcmp.eq.s32.totalorder %v2987_v10, %v2978_v4  ;;  %356 = vperm.xlu0 %2566, %v3207_v28  }
  0xd1   : > { %vm623_vm4 = vmor %vm367_vm14, %vm559_vm1  ;;  %vm812_vm1 = vcmp.eq.s32.totalorder %v2987_v10, %v3038_v24  ;;  %v4297_v24 = vmov 0 }
  0xd2   : > { %vm621_vm14 = vmor %vm365_vm15, %vm557_vm12  ;;  %vm369_vm15 = vcmp.eq.s32.totalorder %v2997_v16, %v3042_v26 }
  0xd3   : > { %2542 = vset.pattern.permute.xlu1 %v2667_v12  ;;  %v724_v36 = vpop.permute.xlu1 %723 }
  0xd4   : > { %vm814_vm5 = vcmp.eq.s32.totalorder %v2987_v10, %v724_v36  ;;  %vm815_vm7 = vcmp.eq.s32.totalorder %v2997_v16, %v724_v36  ;;  %753 = vperm.xlu1 %2542, %v692_v35   ;;  %v3073_v37 = vpop.permute.xlu0 %747  ;;  %2570 = vset.pattern.permute.xlu0 %v2667_v12 }
  0xd5   : > { %vm878_vm9 = vmor %vm622_vm2, %vm814_vm5  ;;  %vm364_vm2 = vcmp.eq.s32.totalorder %v2987_v10, %v2970_v62 }
  0xd6   : > { %vm879_vm10 = vmor %vm623_vm4, %vm815_vm7  ;;  %vm362_vm4 = vcmp.eq.s32.totalorder %v2987_v10, %v2964_v56  ;;  %vm1069_vm7 = vcmp.eq.s32.totalorder %v2997_v16, %v3021_v21 }
  0xd7   : > { %v3078_v40 = vpop.permute.xlu1 %726  ;;  %vm3080_vm11 = vmor %vm879_vm10, %vm1071_vm3 }
  0xd8   : > { %v4278_v42 = vsel %vm3080_vm11, 4294967295, %v4277_v42  ;;  %2543 = vset.pattern.permute.xlu1 %v2665_v0  ;;  %v3085_v43 = vpop.permute.xlu0 %756  ;;  %vm3087_vm6 = vmor %vm878_vm9, %vm1070_vm8 }
  0xd9   : > { %v4280_v25 = vsel %vm3087_vm6, 4294967295, %v4279_v25  ;;  %1009 = vperm.xlu1 %2543, %v948_v38   ;;  %vm877_vm3 = vmor %vm621_vm14, %vm813_vm13  ;;  %vm363_vm13 = vcmp.eq.s32.totalorder %v2997_v16, %v2964_v56 }
  0xda   : > { %vm620_vm5 = vmor %vm364_vm2, %vm556_vm0  ;;  %vm1068_vm2 = vcmp.eq.s32.totalorder %v2987_v10, %v3021_v21 }
  0xdb   : > { %vm3130_vm8 = vmor %vm620_vm5, %vm812_vm1 }
  0xdc   : > { %v3092_v45 = vpop.permute.xlu1 %982  ;;  %v3094_v15 = vpop.permute.xlu0 %765  ;;  %vm3141_vm0 = vmor %vm877_vm3, %vm1069_vm7  ;;  %vm811_vm3 = vcmp.eq.s32.totalorder %v2997_v16, %v2990_v11 }
  0xdd   : > { %1012 = vperm.xlu1 %2543, %v949_v41   ;;  %vm3166_vm7 = vmor %vm3130_vm8, %vm1068_vm2  ;;  %vm4294_vm8 = vcmp.eq.s32.totalorder %v2997_v16, %v2973_v63 }
  0xde   : > { %v4290_v48 = vsel %vm3166_vm7, 4294967295, %v4289_v48  ;;  %vm4305_vm7 = vcmp.eq.s32.totalorder %v2987_v10, %v2973_v63  ;;  %v440_v63 = vadd.s32 64, %v2872_v54 }
  0xe0   : > { %v3096_v46 = vpop.permute.xlu0 %771 }
  0xe1   : > { %2545 = vset.pattern.permute.xlu1 %v2668_v14  ;;  %v282_v47 = vpop.permute.xlu1 %281 }
  0xe2   : > { %314 = vperm.xlu1 %2545, %v2910_v18   ;;  %vm371_vm5 = vcmp.eq.s32.totalorder %v2997_v16, %v282_v47  ;;  %vm370_vm6 = vcmp.eq.s32.totalorder %v2987_v10, %v282_v47  ;;  %v702_v47 = vadd.s32 128, %v2984_v8  ;;  %v2598_v18 = vld [vmem:[%s2757_s9 + $0xb0] sm:$0xff] }
  0xe4   : > { %v3101_v50 = vpop.permute.xlu0 %786 }
  0xe6   : > { %2546 = vset.pattern.permute.xlu1 %v2666_v1  ;;  %v474_v53 = vpop.permute.xlu1 %473 }
  0xe7   : > { %503 = vperm.xlu1 %2546, %v438_v49  }
  0xe8   : > { %v3104_v51 = vpop.permute.xlu0 %777 }
  0xea   : > { %v477_v58 = vpop.permute.xlu1 %476 }
  0xeb   : > { %2547 = vset.pattern.permute.xlu1 %v2667_v12  ;;  %vm565_vm14 = vcmp.eq.s32.totalorder %v2997_v16, %v477_v58 }
  0xec   : > { %759 = vperm.xlu1 %2547, %v694_v55   ;;  %v3110_v60 = vpop.permute.xlu0 %792  ;;  %vm3185_vm2 = vmor %vm4294_vm8, %vm565_vm14  ;;  %v4319_v55 = vmov 0 }
  0xed   : > { %v4296_v22 = vsel %vm3185_vm2, 4294967295, %v4295_v22  ;;  %vm4304_vm2 = vcmp.eq.s32.totalorder %v2987_v10, %v477_v58 }
  0xef   : > { %v3121_v32 = vpop.permute.xlu1 %732 }
  0xf0   : > { %762 = vperm.xlu1 %2547, %v695_v3  }
  0xf1   : > { %v462_v5 = vpop.permute.xlu0 %461 }
  0xf2   : > { %vm554_vm10 = vcmp.eq.s32.totalorder %v2987_v10, %v462_v5  ;;  %vm555_vm12 = vcmp.eq.s32.totalorder %v2997_v16, %v462_v5  ;;  %v952_v5 = vadd.s32 192, %v2872_v54 }
  0xf3   : > { %vm3146_vm1 = vmor %vm362_vm4, %vm554_vm10  ;;  %vm810_vm4 = vcmp.eq.s32.totalorder %v2987_v10, %v2990_v11 }
  0xf4   : > { %vm3153_vm9 = vmor %vm363_vm13, %vm555_vm12  ;;  %2548 = vset.pattern.permute.xlu1 %v2665_v0  ;;  %v3158_v13 = vpop.permute.xlu1 %985  ;;  %vm4291_vm12 = vcmp.eq.s32.totalorder %v2997_v16, %v474_v53 }
  0xf5   : > { %vm3173_vm13 = vmor %vm371_vm5, %vm4291_vm12  ;;  %v471_v21 = vpop.permute.xlu0 %470  ;;  %1018 = vperm.xlu1 %2548, %v951_v7   ;;  %v4347_v7 = vmov 0 }
  0xf6   : > { %vm3191_vm5 = vmor %vm3146_vm1, %vm810_vm4  ;;  %vm560_vm12 = vcmp.eq.s32.totalorder %v2987_v10, %v471_v21  ;;  %vm561_vm10 = vcmp.eq.s32.totalorder %v2997_v16, %v471_v21  ;;  %vm368_vm1 = vcmp.eq.s32.totalorder %v2987_v10, %v3042_v26  ;;  %vm4301_vm4 = vcmp.eq.s32.totalorder %v2987_v10, %v474_v53 }
  0xf7   : > { %v4298_v24 = vsel %vm3191_vm5, 4294967295, %v4297_v24  ;;  %vm3202_vm14 = vmor %vm3153_vm9, %vm811_vm3  ;;  %vm819_vm9 = vcmp.eq.s32.totalorder %v2997_v16, %v3052_v30  ;;  %vm817_vm3 = vcmp.eq.s32.totalorder %v2997_v16, %v3078_v40  ;;  %v4317_v53 = vmov 0 }
  0xf8   : > { %vm3213_vm8 = vmor %vm370_vm6, %vm4301_vm4  ;;  %v4338_v26 = vmov 0 }
  0xf9   : > { %vm625_vm11 = vmor %vm369_vm15, %vm561_vm10  ;;  %v480_v36 = vpop.permute.xlu0 %479  ;;  %2549 = vset.pattern.permute.xlu1 %v2668_v14  ;;  %v288_v38 = vpop.permute.xlu1 %287  ;;  %vm1067_vm15 = vcmp.eq.s32.totalorder %v2997_v16, %v3004_v17 }
  0xfa   : > { %vm3227_vm5 = vmor %vm4305_vm7, %vm4304_vm2  ;;  %317 = vperm.xlu1 %2549, %v2872_v54   ;;  %vm1066_vm2 = vcmp.eq.s32.totalorder %v2987_v10, %v3004_v17  ;;  %v3370_v54 = vld [vmem:[%s2757_s9 + $0xf0] sm:$0xff] }
  0xfb   : > { %vm3231_vm6 = vmor %vm368_vm1, %vm560_vm12  ;;  %vm821_vm12 = vcmp.eq.s32.totalorder %v2997_v16, %v3121_v32  ;;  %v708_v62 = vadd.s32 128, %v3370_v54  ;;  %v452_v58 = vadd.s32 64, %v3370_v54 }
  0xfc   : > { %vm3238_vm10 = vmor %vm625_vm11, %vm817_vm3  ;;  %vm4315_vm3 = vnez %v4290_v48  ;;  %v965_v48 = vadd.s32 192, %v3207_v28 }
  0xfd   : > { %vm1131_vm7 = vmor %vm3202_vm14, %vm1067_vm15  ;;  %vm4314_vm14 = vnez %v4298_v24  ;;  %v291_v17 = vpop.permute.xlu1 %290  ;;  %v3265_v49 = vpop.permute.xlu0 %488  ;;  %801 = vperm.xlu0 %2570, %v708_v62   ;;  %v442_v24 = vadd.s32 64, %v2876_v57 }
  0xfe   : > { %vm2190_vm1 = vmpackc.low %vm3141_vm0, %vm1131_vm7  ;;  %vm816_vm0 = vcmp.eq.s32.totalorder %v2987_v10, %v3078_v40  ;;  %2550 = vset.pattern.permute.xlu1 %v2666_v1  ;;  %v441_v40 = vadd.s32 64, %v2942_v39 }
  0xff   : > { %vm3257_vm11 = vmor %vm3173_vm13, %vm819_vm9  ;;  %2191 = vmatprep.mubr.msk.bf16.mxu0 %vm2190_vm1, %v2669_v33  ;;  %vm820_vm13 = vcmp.eq.s32.totalorder %v2987_v10, %v3121_v32  ;;  %vm4316_vm9 = vnez %v4296_v22  ;;  %vm374_vm1 = vcmp.eq.s32.totalorder %v2987_v10, %v288_v38  ;;  %509 = vperm.xlu1 %2550, %v440_v63   ;;  %v699_v63 = vadd.s32 128, %v2915_v20 }
 0x100   : > { %vm1130_vm4 = vmor %vm4314_vm14, %vm1066_vm2  ;;  %vm566_vm2 = vcmp.eq.s32.totalorder %v2987_v10, %v480_v36  ;;  %vm1075_vm14 = vcmp.eq.s32.totalorder %v2997_v16, %v3158_v13 }
 0x101   : > { %vm2192_vm15 = vmpackc.low %vm4315_vm3, %vm1130_vm4  ;;  %vm1073_vm4 = vcmp.eq.s32.totalorder %v2997_v16, %v3092_v45  ;;  %v3308_v32 = vpop.permute.xlu0 %497  ;;  %2573 = vset.pattern.permute.xlu0 %v2665_v0 }
 0x102   : > { %vm3276_vm7 = vmor %vm4316_vm9, %vm821_vm12  ;;  %2193 = vmatmul.mubr.msk.bf16.gmra.mrb[4].mxu0 %vm2192_vm15, %v2669_v33  ;;  %vm1072_vm15 = vcmp.eq.s32.totalorder %v2987_v10, %v3092_v45  ;;  %v483_v3 = vpop.permute.xlu1 %482  ;;  %1060 = vperm.xlu0 %2573, %v965_v48   ;;  %v444_v45 = vadd.s32 64, %v2886_v61  ;;  %v2599_v48 = vld [vmem:[%s2757_s9 + $0xd8] sm:$0xff] }
 0x103   : > { %v4318_v53 = vsel %vm3276_vm7, 4294967295, %v4317_v53  ;;  %vm880_vm12 = vmor %vm3231_vm6, %vm816_vm0  ;;  %vm4323_vm6 = vnez %v4278_v42  ;;  %512 = vperm.xlu1 %2550, %v441_v40   ;;  %v697_v42 = vadd.s32 128, %v2942_v39 }
 0x104   : > { %vm1137_vm3 = vmor %vm3238_vm10, %vm1073_vm4  ;;  %vm1077_vm10 = vcmp.eq.s32.totalorder %v2997_v16, %v2950_v44 }
 0x105   : > { %vm3296_vm9 = vmor %vm3227_vm5, %vm820_vm13  ;;  %vm4324_vm13 = vcmp.eq.s32.totalorder %v2987_v10, %v3052_v30  ;;  %v3339_v30 = vpop.permute.xlu0 %506 }
 0x106   : > { %v4320_v55 = vsel %vm3296_vm9, 4294967295, %v4319_v55  ;;  %vm3302_vm7 = vmor %vm374_vm1, %vm566_vm2  ;;  %vm4327_vm1 = vnez %v4280_v25  ;;  %vm569_vm9 = vcmp.eq.s32.totalorder %v2997_v16, %v483_v3 }
 0x107   : > { %vm2194_vm0 = vmpackc.low %vm1137_vm3, %vm4323_vm6  ;;  %vm567_vm3 = vcmp.eq.s32.totalorder %v2997_v16, %v480_v36  ;;  %vm375_vm6 = vcmp.eq.s32.totalorder %v2997_v16, %v288_v38  ;;  %2551 = vset.pattern.permute.xlu1 %v2667_v12  ;;  %v736_v39 = vpop.permute.xlu1 %735  ;;  %v447_v36 = vadd.s32 64, %v2881_v59  ;;  %v706_v38 = vadd.s32 128, %v2960_v52 }
 0x108   : > { %2195 = vmatprep.mubr.msk.bf16.mxu0 %vm2194_vm0, %v2669_v33  ;;  %vm1136_vm5 = vmor %vm880_vm12, %vm1072_vm15  ;;  %vm4328_vm15 = vnez %v4318_v53  ;;  %768 = vperm.xlu1 %2551, %v697_v42   ;;  %v958_v53 = vadd.s32 192, %v2984_v8  ;;  %v959_v8 = vadd.s32 192, %v2881_v59 }
 0x109   : > { %vm3318_vm2 = vmor %vm3213_vm8, %vm4324_vm13  ;;  %vm568_vm8 = vcmp.eq.s32.totalorder %v2987_v10, %v483_v3  ;;  %v3383_v56 = vpop.permute.xlu0 %518 }
 0x10a   : > { %vm2196_vm4 = vmpackc.low %vm1136_vm5, %vm4327_vm1  ;;  %vm376_vm1 = vcmp.eq.s32.totalorder %v2987_v10, %v291_v17 }
 0x10b   : > { %vm1139_vm12 = vmor %vm3257_vm11, %vm1075_vm14  ;;  %2197 = vmatmul.mubr.msk.bf16.gmra.mrb[8].mxu0 %vm2196_vm4, %v2669_v33  ;;  %vm822_vm11 = vcmp.eq.s32.totalorder %v2987_v10, %v736_v39  ;;  %vm823_vm14 = vcmp.eq.s32.totalorder %v2997_v16, %v736_v39  ;;  %vm377_vm4 = vcmp.eq.s32.totalorder %v2997_v16, %v291_v17 }
 0x10c   : > { %vm1141_vm0 = vmor %vm4328_vm15, %vm1077_vm10  ;;  %vm1074_vm10 = vcmp.eq.s32.totalorder %v2987_v10, %v3158_v13  ;;  %2552 = vset.pattern.permute.xlu1 %v2665_v0 }
 0x10d   : > { %vm2198_vm13 = vmpackc.low %vm1141_vm0, %vm1139_vm12  ;;  %1021 = vperm.xlu1 %2552, %v952_v5   ;;  %v449_v5 = vadd.s32 64, %v2891_v2  ;;  %v701_v2 = vadd.s32 128, %v2920_v23 }
 0x10e   : > { %vm631_vm5 = vmor %vm375_vm6, %vm567_vm3  ;;  %2199 = vmatprep.mubr.msk.bf16.mxu0 %vm2198_vm13, %v2669_v33  ;;  %vm1076_vm3 = vcmp.eq.s32.totalorder %v2987_v10, %v2950_v44  ;;  %v992_v44 = vpop.permute.xlu1 %991 }
 0x10f   : > { %vm3346_vm12 = vmor %vm376_vm1, %vm568_vm8  ;;  %vm825_vm8 = vcmp.eq.s32.totalorder %v2997_v16, %v3062_v34  ;;  %vm824_vm1 = vcmp.eq.s32.totalorder %v2987_v10, %v3062_v34  ;;  %v3401_v34 = vpop.permute.xlu0 %524 }
 0x110   : > { %vm3355_vm6 = vmor %vm377_vm4, %vm569_vm9 }
 0x111   : > { %vm3361_vm15 = vmor %vm3302_vm7, %vm822_vm11  ;;  %vm4337_vm7 = vnez %v4320_v55  ;;  %2553 = vset.pattern.permute.xlu1 %v2668_v14 }
 0x112   : > { %vm3365_vm0 = vmor %vm631_vm5, %vm823_vm14  ;;  %vm1079_vm5 = vcmp.eq.s32.totalorder %v2997_v16, %v992_v44  ;;  %v995_v13 = vpop.permute.xlu1 %994  ;;  %323 = vperm.xlu1 %2553, %v2876_v57  }
 0x113   : > { %vm1138_vm9 = vmor %vm3318_vm2, %vm1074_vm10  ;;  %vm1078_vm10 = vcmp.eq.s32.totalorder %v2987_v10, %v992_v44  ;;  %vm1081_vm4 = vcmp.eq.s32.totalorder %v2997_v16, %v995_v13  ;;  %v3407_v22 = vpop.permute.xlu0 %542  ;;  %v956_v44 = vadd.s32 192, %v2598_v18 }
 0x114   : > { %vm1140_vm13 = vmor %vm4337_vm7, %vm1076_vm3 }
 0x115   : > { %vm2200_vm11 = vmpackc.low %vm1140_vm13, %vm1138_vm9  ;;  %vm1080_vm9 = vcmp.eq.s32.totalorder %v2987_v10, %v995_v13 }
 0x116   : > { %2201 = vmatmul.mubr.msk.bf16.gmra.mrb[12].mxu0 %vm2200_vm11, %v2669_v33  ;;  %vm889_vm2 = vmor %vm3355_vm6, %vm825_vm8  ;;  %v297_v19 = vpop.permute.xlu1 %296  ;;  %326 = vperm.xlu1 %2553, %v2915_v20   ;;  %vm379_vm11 = vcmp.eq.s32.totalorder %v2997_v16, %v2980_v6  ;;  %v954_v20 = vadd.s32 192, %v2876_v57 }
 0x117   : > { %vm1143_vm14 = vmor %vm3365_vm0, %vm1079_vm5  ;;  %vm380_vm13 = vcmp.eq.s32.totalorder %v2987_v10, %v297_v19  ;;  %vm378_vm5 = vcmp.eq.s32.totalorder %v2987_v10, %v2980_v6  ;;  %v998_v35 = vpop.permute.xlu0 %997 }
 0x118   : > { %vm888_vm3 = vmor %vm3346_vm12, %vm824_vm1 }
 0x119   : > { %vm1145_vm7 = vmor %vm889_vm2, %vm1081_vm4 }
 0x11a   : > { %vm2202_vm6 = vmpackc.low %vm1145_vm7, %vm1143_vm14  ;;  %338 = vperm.xlu1 %2553, %v2881_v59   ;;  %v486_v21 = vpop.permute.xlu1 %485  ;;  %vm381_vm7 = vcmp.eq.s32.totalorder %v2997_v16, %v297_v19  ;;  %v961_v19 = vadd.s32 192, %v2599_v48 }
 0x11b   : > { %2203 = vmatprep.mubr.msk.bf16.mxu0 %vm2202_vm6, %v2669_v33  ;;  %vm1142_vm0 = vmor %vm3361_vm15, %vm1078_vm10  ;;  %vm572_vm15 = vcmp.eq.s32.totalorder %v2987_v10, %v3265_v49  ;;  %vm570_vm1 = vcmp.eq.s32.totalorder %v2987_v10, %v486_v21  ;;  %vm571_vm2 = vcmp.eq.s32.totalorder %v2997_v16, %v486_v21  ;;  %v1007_v55 = vpop.permute.xlu0 %1006 }
 0x11c   : > { %vm1144_vm8 = vmor %vm888_vm3, %vm1080_vm9  ;;  %vm573_vm9 = vcmp.eq.s32.totalorder %v2997_v16, %v3265_v49 }
 0x11d   : > { %vm2204_vm12 = vmpackc.low %vm1144_vm8, %vm1142_vm0  ;;  %vm1082_vm8 = vcmp.eq.s32.totalorder %v2987_v10, %v998_v35 }
 0x11e   : > { %2205 = vmatmul.mubr.msk.bf16.gmra.mrb[16].mxu0 %vm2204_vm12, %v2669_v33  ;;  %2554 = vset.pattern.permute.xlu1 %v2666_v1  ;;  %vm3421_vm14 = vmor %vm380_vm13, %vm572_vm15  ;;  %vm1083_vm15 = vcmp.eq.s32.totalorder %v2997_v16, %v998_v35  ;;  %v450_v35 = vadd.s32 64, %v2960_v52 }
 0x11f   : > { %515 = vperm.xlu1 %2554, %v442_v24   ;;  %v742_v11 = vpop.permute.xlu1 %741  ;;  %v4339_v26 = vsel %vm3421_vm14, 4294967295, %v4338_v26  ;;  %vm634_vm4 = vmor %vm378_vm5, %vm570_vm1  ;;  %v1016_v21 = vpop.permute.xlu0 %1015 }
 0x120   : > { %vm826_vm10 = vcmp.eq.s32.totalorder %v2987_v10, %v742_v11  ;;  %vm827_vm3 = vcmp.eq.s32.totalorder %v2997_v16, %v742_v11  ;;  %vm635_vm6 = vmor %vm379_vm11, %vm571_vm2  ;;  %vm4342_vm2 = vnez %v4339_v26  ;;  %v4374_v26 = vmov 0 }
 0x121   : > { %vm890_vm0 = vmor %vm634_vm4, %vm826_vm10 }
 0x122   : > { %vm891_vm12 = vmor %vm635_vm6, %vm827_vm3 }
 0x123   : > { %527 = vperm.xlu1 %2554, %v446_v31   ;;  %v745_v6 = vpop.permute.xlu1 %744  ;;  %vm637_vm13 = vmor %vm381_vm7, %vm573_vm9  ;;  %v3536_v11 = vpop.permute.xlu0 %1024 }
 0x124   : > { %vm828_vm5 = vcmp.eq.s32.totalorder %v2987_v10, %v745_v6  ;;  %vm3434_vm1 = vmor %vm890_vm0, %vm1082_vm8  ;;  %vm829_vm14 = vcmp.eq.s32.totalorder %v2997_v16, %v745_v6 }
 0x125   : > { %vm1147_vm11 = vmor %vm891_vm12, %vm1083_vm15 }
 0x126   : > { %vm892_vm10 = vmor %vm4342_vm2, %vm828_vm5 }
 0x127   : > { %530 = vperm.xlu1 %2554, %v447_v36   ;;  %vm893_vm4 = vmor %vm637_vm13, %vm829_vm14  ;;  %vm830_vm13 = vcmp.eq.s32.totalorder %v2987_v10, %v3073_v37  ;;  %v3557_v6 = vpop.permute.xlu0 %1030 }
 0x128   : > { %v1001_v41 = vpop.permute.xlu1 %1000 }
 0x129   : > { %vm1084_vm3 = vcmp.eq.s32.totalorder %v2987_v10, %v1001_v41  ;;  %vm1085_vm9 = vcmp.eq.s32.totalorder %v2997_v16, %v1001_v41 }
 0x12a   : > { %vm1149_vm7 = vmor %vm893_vm4, %vm1085_vm9 }
 0x12b   : > { %2555 = vset.pattern.permute.xlu1 %v2667_v12  ;;  %vm2206_vm6 = vmpackc.low %vm1149_vm7, %vm1147_vm11  ;;  %v3576_v41 = vpop.permute.xlu0 %1036 }
 0x12c   : > { %774 = vperm.xlu1 %2555, %v699_v63   ;;  %2207 = vmatprep.mubr.msk.bf16.mxu0 %vm2206_vm6, %v2669_v33  ;;  %vm1148_vm0 = vmor %vm892_vm10, %vm1084_vm3  ;;  %vm385_vm10 = vcmp.eq.s32.totalorder %v2997_v16, %v2992_v9  ;;  %vm831_vm6 = vcmp.eq.s32.totalorder %v2997_v16, %v3073_v37  ;;  %v2600_v63 = vld [vmem:[%s2757_s9 + $0xe8] sm:$0xff] }
 0x12d   : > { %vm2208_vm8 = vmpackc.low %vm1148_vm0, %vm3434_vm1  ;;  %v300_v17 = vpop.permute.xlu1 %299  ;;  %vm384_vm1 = vcmp.eq.s32.totalorder %v2987_v10, %v2992_v9  ;;  %v253_v9 = vld [vmem:[%s2757_s9 + $0xd0] sm:$0xff] }
 0x12e   : > { %2209 = vmatmul.mubr.msk.bf16.gmra.mrb[20].mxu0 %vm2208_vm8, %v2669_v33  ;;  %vm382_vm12 = vcmp.eq.s32.totalorder %v2987_v10, %v300_v17  ;;  %vm383_vm11 = vcmp.eq.s32.totalorder %v2997_v16, %v300_v17  ;;  %v448_v39 = vadd.s32 64, %v253_v9  ;;  %v960_v13 = vadd.s32 192, %v253_v9 }
 0x12f   : > { %v3586_v17 = vpop.permute.xlu0 %1051 }
 0x130   : > { %783 = vperm.xlu1 %2555, %v702_v47   ;;  %v707_v47 = vadd.s32 128, %v2600_v63 }
 0x132   : > { %v492_v49 = vpop.permute.xlu1 %491 }
 0x133   : > { %vm574_vm14 = vcmp.eq.s32.totalorder %v2987_v10, %v492_v49  ;;  %vm575_vm15 = vcmp.eq.s32.totalorder %v2997_v16, %v492_v49 }
 0x134   : > { %2556 = vset.pattern.permute.xlu1 %v2665_v0  ;;  %vm638_vm5 = vmor %vm382_vm12, %vm574_vm14 }
 0x135   : > { %1027 = vperm.xlu1 %2556, %v954_v20   ;;  %vm3464_vm4 = vmor %vm383_vm11, %vm575_vm15  ;;  %vm1088_vm15 = vcmp.eq.s32.totalorder %v2987_v10, %v1007_v55  ;;  %v963_v20 = vadd.s32 192, %v2600_v63 }
 0x136   : > { %v495_v40 = vpop.permute.xlu1 %494  ;;  %vm3470_vm9 = vmor %vm638_vm5, %vm830_vm13  ;;  %vm1089_vm13 = vcmp.eq.s32.totalorder %v2997_v16, %v1007_v55 }
 0x137   : > { %vm576_vm2 = vcmp.eq.s32.totalorder %v2987_v10, %v495_v40  ;;  %vm577_vm3 = vcmp.eq.s32.totalorder %v2997_v16, %v495_v40  ;;  %vm895_vm5 = vmor %vm3464_vm4, %vm831_vm6 }
 0x138   : > { %vm640_vm7 = vmor %vm384_vm1, %vm576_vm2 }
 0x139   : > { %1039 = vperm.xlu1 %2556, %v958_v53   ;;  %vm641_vm0 = vmor %vm385_vm10, %vm577_vm3  ;;  %v321_v53 = vpop.permute.xlu0 %320 }
 0x13b   : > { %v751_v3 = vpop.permute.xlu1 %750 }
 0x13c   : > { %vm832_vm8 = vcmp.eq.s32.totalorder %v2987_v10, %v751_v3  ;;  %vm833_vm14 = vcmp.eq.s32.totalorder %v2997_v16, %v751_v3 }
 0x13d   : > { %vm896_vm12 = vmor %vm640_vm7, %vm832_vm8  ;;  %1042 = vperm.xlu1 %2556, %v959_v8   ;;  %v2595_v8 = vld [vmem:[%s4268_s3 + $0x28] sm:$0xff]  }
 0x13e   : > { %vm897_vm11 = vmor %vm641_vm0, %vm833_vm14 }
 0x13f   : > { %vm1152_vm1 = vmor %vm896_vm12, %vm1088_vm15  ;;  %vm579_vm15 = vcmp.eq.s32.totalorder %v2997_v16, %v3308_v32 }
 0x140   : > { %v1004_v59 = vpop.permute.xlu1 %1003  ;;  %vm1153_vm2 = vmor %vm897_vm11, %vm1089_vm13 }
 0x141   : > { %vm1086_vm10 = vcmp.eq.s32.totalorder %v2987_v10, %v1004_v59  ;;  %vm1087_vm3 = vcmp.eq.s32.totalorder %v2997_v16, %v1004_v59  ;;  %2557 = vset.pattern.permute.xlu1 %v2668_v14 }
 0x142   : > { %vm1150_vm7 = vmor %vm3470_vm9, %vm1086_vm10  ;;  %332 = vperm.xlu1 %2557, %v2920_v23   ;;  %vm578_vm9 = vcmp.eq.s32.totalorder %v2987_v10, %v3308_v32  ;;  %v704_v32 = vadd.s32 128, %v253_v9 }
 0x143   : > { %vm1151_vm0 = vmor %vm895_vm5, %vm1087_vm3  ;;  %vm837_vm3 = vcmp.eq.s32.totalorder %v2997_v16, %v3085_v43 }
 0x144   : > { %vm2210_vm8 = vmpackc.low %vm1153_vm2, %vm1151_vm0 }
 0x145   : > { %2211 = vmatprep.mubr.msk.bf16.mxu0 %vm2210_vm8, %v2669_v33  ;;  %vm2212_vm4 = vmpackc.low %vm1152_vm1, %vm1150_vm7  ;;  %v306_v37 = vpop.permute.xlu1 %305  ;;  %vm836_vm1 = vcmp.eq.s32.totalorder %v2987_v10, %v3085_v43 }
 0x146   : > { %2213 = vmatmul.mubr.msk.bf16.gmra.mrb[24].mxu0 %vm2212_vm4, %v2669_v33  ;;  %341 = vperm.xlu1 %2557, %v253_v9   ;;  %vm386_vm6 = vcmp.eq.s32.totalorder %v2987_v10, %v306_v37  ;;  %vm387_vm11 = vcmp.eq.s32.totalorder %v2997_v16, %v306_v37  ;;  %v964_v37 = vadd.s32 192, %v3370_v54 }
 0x147   : > { %vm3502_vm13 = vmor %vm386_vm6, %vm578_vm9 }
 0x148   : > { %v4348_v7 = vsel %vm3502_vm13, 4294967295, %v4347_v7  ;;  %vm643_vm0 = vmor %vm387_vm11, %vm579_vm15 }
 0x149   : > { %v309_v42 = vpop.permute.xlu1 %308 }
 0x14a   : > { %2558 = vset.pattern.permute.xlu1 %v2666_v1  ;;  %vm388_vm5 = vcmp.eq.s32.totalorder %v2987_v10, %v309_v42  ;;  %vm389_vm2 = vcmp.eq.s32.totalorder %v2997_v16, %v309_v42 }
 0x14b   : > { %521 = vperm.xlu1 %2558, %v444_v45  }
 0x14e   : > { %v501_v25 = vpop.permute.xlu1 %500 }
 0x14f   : > { %533 = vperm.xlu1 %2558, %v448_v39   ;;  %vm580_vm14 = vcmp.eq.s32.totalorder %v2987_v10, %v501_v25  ;;  %vm581_vm12 = vcmp.eq.s32.totalorder %v2997_v16, %v501_v25 }
 0x150   : > { %vm644_vm10 = vmor %vm388_vm5, %vm580_vm14  ;;  %vm4349_vm14 = vnez %v4348_v7 }
 0x151   : > { %vm645_vm7 = vmor %vm389_vm2, %vm581_vm12 }
 0x152   : > { %vm900_vm9 = vmor %vm644_vm10, %vm836_vm1 }
 0x153   : > { %536 = vperm.xlu1 %2558, %v449_v5   ;;  %v754_v61 = vpop.permute.xlu1 %753  ;;  %vm901_vm13 = vmor %vm645_vm7, %vm837_vm3 }
 0x154   : > { %vm834_vm8 = vcmp.eq.s32.totalorder %v2987_v10, %v754_v61  ;;  %vm835_vm4 = vcmp.eq.s32.totalorder %v2997_v16, %v754_v61 }
 0x155   : > { %vm898_vm5 = vmor %vm4349_vm14, %vm834_vm8  ;;  %vm391_vm14 = vcmp.eq.s32.totalorder %v2997_v16, %v3000_v29 }
 0x156   : > { %vm899_vm15 = vmor %vm643_vm0, %vm835_vm4 }
 0x157   : > { %2559 = vset.pattern.permute.xlu1 %v2667_v12 }
 0x158   : > { %780 = vperm.xlu1 %2559, %v701_v2   ;;  %v1010_v23 = vpop.permute.xlu1 %1009 }
 0x159   : > { %vm1090_vm6 = vcmp.eq.s32.totalorder %v2987_v10, %v1010_v23  ;;  %vm1091_vm12 = vcmp.eq.s32.totalorder %v2997_v16, %v1010_v23 }
 0x15a   : > { %vm3520_vm11 = vmor %vm898_vm5, %vm1090_vm6 }
 0x15b   : > { %vm1155_vm2 = vmor %vm899_vm15, %vm1091_vm12 }
 0x15c   : > { %789 = vperm.xlu1 %2559, %v704_v32   ;;  %v1013_v4 = vpop.permute.xlu1 %1012 }
 0x15d   : > { %vm1092_vm1 = vcmp.eq.s32.totalorder %v2987_v10, %v1013_v4  ;;  %vm1093_vm10 = vcmp.eq.s32.totalorder %v2997_v16, %v1013_v4 }
 0x15e   : > { %vm1156_vm3 = vmor %vm900_vm9, %vm1092_vm1  ;;  %vm390_vm9 = vcmp.eq.s32.totalorder %v2987_v10, %v3000_v29  ;;  %vm585_vm1 = vcmp.eq.s32.totalorder %v2997_v16, %v3339_v30 }
 0x15f   : > { %vm1157_vm7 = vmor %vm901_vm13, %vm1093_vm10  ;;  %vm584_vm13 = vcmp.eq.s32.totalorder %v2987_v10, %v3339_v30 }
 0x160   : > { %2561 = vset.pattern.permute.xlu1 %v2665_v0  ;;  %vm2214_vm8 = vmpackc.low %vm1157_vm7, %vm1155_vm2 }
 0x161   : > { %2215 = vmatprep.mubr.msk.bf16.mxu0 %vm2214_vm8, %v2669_v33  ;;  %1033 = vperm.xlu1 %2561, %v956_v44   ;;  %vm2216_vm0 = vmpackc.low %vm1156_vm3, %vm3520_vm11  ;;  %v315_v62 = vpop.permute.xlu1 %314  ;;  %vm1094_vm8 = vcmp.eq.s32.totalorder %v2987_v10, %v1016_v21  ;;  %v336_v44 = vpop.permute.xlu0 %335 }
 0x162   : > { %2217 = vmatmul.mubr.msk.bf16.gmra.mrb[28].mxu0 %vm2216_vm0, %v2669_v33  ;;  %vm392_vm4 = vcmp.eq.s32.totalorder %v2987_v10, %v315_v62  ;;  %vm393_vm10 = vcmp.eq.s32.totalorder %v2997_v16, %v315_v62 }
 0x163   : > { %vm3544_vm12 = vmor %vm392_vm4, %vm584_vm13  ;;  %vm1095_vm13 = vcmp.eq.s32.totalorder %v2997_v16, %v1016_v21  ;;  %v4370_v21 = vmov 0 }
 0x164   : > { %vm649_vm4 = vmor %vm393_vm10, %vm585_vm1 }
 0x165   : > { %1045 = vperm.xlu1 %2561, %v960_v13   ;;  %v4368_v13 = vmov 0  ;;  %v330_v57 = vpop.permute.xlu0 %329 }
 0x166   : > { %v504_v24 = vpop.permute.xlu1 %503 }
 0x167   : > { %vm582_vm6 = vcmp.eq.s32.totalorder %v2987_v10, %v504_v24  ;;  %vm583_vm5 = vcmp.eq.s32.totalorder %v2997_v16, %v504_v24 }
 0x168   : > { %vm646_vm11 = vmor %vm390_vm9, %vm582_vm6 }
 0x169   : > { %1048 = vperm.xlu1 %2561, %v961_v19   ;;  %vm647_vm3 = vmor %vm391_vm14, %vm583_vm5 }
 0x16b   : > { %v760_v31 = vpop.permute.xlu1 %759 }
 0x16c   : > { %vm838_vm15 = vcmp.eq.s32.totalorder %v2987_v10, %v760_v31  ;;  %vm839_vm2 = vcmp.eq.s32.totalorder %v2997_v16, %v760_v31  ;;  %v4372_v31 = vmov 0 }
 0x16d   : > { %2562 = vset.pattern.permute.xlu1 %v2668_v14  ;;  %vm902_vm7 = vmor %vm646_vm11, %vm838_vm15 }
 0x16e   : > { %350 = vperm.xlu1 %2562, %v2924_v27   ;;  %vm903_vm0 = vmor %vm647_vm3, %vm839_vm2  ;;  %v4387_v27 = vmov 0 }
 0x16f   : > { %v763_v29 = vpop.permute.xlu1 %762  ;;  %vm3561_vm6 = vmor %vm902_vm7, %vm1094_vm8 }
 0x170   : > { %vm840_vm9 = vcmp.eq.s32.totalorder %v2987_v10, %v763_v29  ;;  %vm841_vm14 = vcmp.eq.s32.totalorder %v2997_v16, %v763_v29  ;;  %vm3567_vm5 = vmor %vm903_vm0, %vm1095_vm13  ;;  %v4376_v29 = vmov 0 }
 0x171   : > { %vm904_vm15 = vmor %vm3544_vm12, %vm840_vm9 }
 0x172   : > { %2563 = vset.pattern.permute.xlu1 %v2666_v1  ;;  %vm905_vm11 = vmor %vm649_vm4, %vm841_vm14  ;;  %vm842_vm4 = vcmp.eq.s32.totalorder %v2987_v10, %v3094_v15  ;;  %vm396_vm14 = vcmp.eq.s32.totalorder %v2987_v10, %v321_v53 }
 0x173   : > { %539 = vperm.xlu1 %2563, %v450_v35   ;;  %v4381_v35 = vmov 0 }
 0x174   : > { %v1019_v36 = vpop.permute.xlu1 %1018 }
 0x175   : > { %vm1096_vm2 = vcmp.eq.s32.totalorder %v2987_v10, %v1019_v36  ;;  %vm1097_vm1 = vcmp.eq.s32.totalorder %v2997_v16, %v1019_v36 }
 0x176   : > { %vm1160_vm10 = vmor %vm904_vm15, %vm1096_vm2 }
 0x177   : > { %vm1161_vm3 = vmor %vm905_vm11, %vm1097_vm1  ;;  %2565 = vset.pattern.permute.xlu1 %v2667_v12  ;;  %vm397_vm11 = vcmp.eq.s32.totalorder %v2997_v16, %v321_v53  ;;  %v2594_v53 = vld [vmem:[%s4268_s3 + $0x20] sm:$0xff]  }
 0x178   : > { %795 = vperm.xlu1 %2565, %v706_v38   ;;  %vm2218_vm7 = vmpackc.low %vm1161_vm3, %vm3567_vm5  ;;  %vm843_vm3 = vcmp.eq.s32.totalorder %v2997_v16, %v3094_v15  ;;  %v453_v15 = vadd.s32 64, %v3207_v28  ;;  %v2591_v38 = vld [vmem:[%s4268_s3 + $0x8] sm:$0xff]  }
 0x179   : > { %2219 = vmatprep.mubr.msk.bf16.mxu0 %vm2218_vm7, %v2669_v33  ;;  %vm2220_vm12 = vmpackc.low %vm1160_vm10, %vm3561_vm6  ;;  %v318_v52 = vpop.permute.xlu1 %317 }
 0x17a   : > { %2221 = vmatmul.mubr.msk.bf16.gmra.mrb[32].mxu0 %vm2220_vm12, %v2669_v33  ;;  %vm394_vm0 = vcmp.eq.s32.totalorder %v2987_v10, %v318_v52  ;;  %vm395_vm6 = vcmp.eq.s32.totalorder %v2997_v16, %v318_v52 }
 0x17c   : > { %798 = vperm.xlu1 %2565, %v707_v47   ;;  %v2592_v47 = vld [vmem:[%s4268_s3 + $0x10] sm:$0xff]  }
 0x17e   : > { %v510_v49 = vpop.permute.xlu1 %509 }
 0x17f   : > { %vm586_vm8 = vcmp.eq.s32.totalorder %v2987_v10, %v510_v49  ;;  %vm587_vm13 = vcmp.eq.s32.totalorder %v2997_v16, %v510_v49 }
 0x180   : > { %2567 = vset.pattern.permute.xlu1 %v2665_v0  ;;  %vm650_vm9 = vmor %vm394_vm0, %vm586_vm8  ;;  %vm1100_vm0 = vcmp.eq.s32.totalorder %v2987_v10, %v3536_v11 }
 0x181   : > { %1054 = vperm.xlu1 %2567, %v963_v20   ;;  %vm3597_vm15 = vmor %vm395_vm6, %vm587_vm13  ;;  %v2593_v20 = vld [vmem:[%s4268_s3 + $0x18] sm:$0xff]  }
 0x182   : > { %v513_v40 = vpop.permute.xlu1 %512  ;;  %vm3605_vm1 = vmor %vm650_vm9, %vm842_vm4  ;;  %vm1101_vm4 = vcmp.eq.s32.totalorder %v2997_v16, %v3536_v11 }
 0x183   : > { %vm588_vm5 = vcmp.eq.s32.totalorder %v2987_v10, %v513_v40  ;;  %vm589_vm2 = vcmp.eq.s32.totalorder %v2997_v16, %v513_v40  ;;  %vm907_vm6 = vmor %vm3597_vm15, %vm843_vm3 }
 0x184   : > { %vm652_vm10 = vmor %vm396_vm14, %vm588_vm5 }
 0x185   : > { %2568 = vset.pattern.permute.xlu1 %v2668_v14  ;;  %vm653_vm7 = vmor %vm397_vm11, %vm589_vm2  ;;  %v3619_v14 = vld [vmem:[%s4268_s3] sm:$0xff]  }
 0x186   : > { %353 = vperm.xlu1 %2568, %v3370_v54   ;;  %2401 = vmatprep.subr.bf16.mxu1 %v3619_v14 }
 0x187   : > { %v769_v55 = vpop.permute.xlu1 %768 }
 0x188   : > { %vm844_vm12 = vcmp.eq.s32.totalorder %v2987_v10, %v769_v55  ;;  %vm845_vm8 = vcmp.eq.s32.totalorder %v2997_v16, %v769_v55 }
 0x189   : > { %vm908_vm13 = vmor %vm652_vm10, %vm844_vm12 }
 0x18a   : > { %vm909_vm9 = vmor %vm653_vm7, %vm845_vm8  ;;  %2569 = vset.pattern.permute.xlu1 %v2666_v1  ;;  %v709_v1 = vadd.s32 128, %v3207_v28  ;;  %v3641_v28 = vld [vmem:[%s4267_s2] ss:$0 sm:$0xff] }
 0x18b   : > { %545 = vperm.xlu1 %2569, %v452_v58   ;;  %vm1164_vm14 = vmor %vm908_vm13, %vm1100_vm0  ;;  %vm593_vm13 = vcmp.eq.s32.totalorder %v2997_v16, %v3383_v56 }
 0x18c   : > { %v1022_v3 = vpop.permute.xlu1 %1021  ;;  %vm1165_vm5 = vmor %vm909_vm9, %vm1101_vm4 }
 0x18d   : > { %vm1098_vm11 = vcmp.eq.s32.totalorder %v2987_v10, %v1022_v3  ;;  %vm1099_vm2 = vcmp.eq.s32.totalorder %v2997_v16, %v1022_v3 }
 0x18e   : > { %vm1162_vm10 = vmor %vm3605_vm1, %vm1098_vm11  ;;  %vm592_vm1 = vcmp.eq.s32.totalorder %v2987_v10, %v3383_v56 }
 0x18f   : > { %vm1163_vm7 = vmor %vm907_vm6, %vm1099_vm2  ;;  %548 = vperm.xlu1 %2569, %v453_v15  }
 0x190   : > { %vm2222_vm12 = vmpackc.low %vm1165_vm5, %vm1163_vm7 }
 0x191   : > { %2223 = vmatprep.mubr.msk.bf16.mxu0 %vm2222_vm12, %v2669_v33  ;;  %vm2224_vm15 = vmpackc.low %vm1164_vm14, %vm1162_vm10  ;;  %v324_v59 = vpop.permute.xlu1 %323  ;;  %vm846_vm10 = vcmp.eq.s32.totalorder %v2987_v10, %v3096_v46  ;;  %vm847_vm12 = vcmp.eq.s32.totalorder %v2997_v16, %v3096_v46  ;;  %v4378_v46 = vmov 0 }
 0x192   : > { %2225 = vmatmul.mubr.msk.bf16.gmra.mrb[36].mxu0 %vm2224_vm15, %v2669_v33  ;;  %vm398_vm4 = vcmp.eq.s32.totalorder %v2987_v10, %v324_v59  ;;  %vm399_vm5 = vcmp.eq.s32.totalorder %v2997_v16, %v324_v59 }
 0x193   : > { %2571 = vset.pattern.permute.xlu1 %v2667_v12 }
 0x194   : > { %804 = vperm.xlu1 %2571, %v709_v1   ;;  %v2596_v1 = vld [vmem:[%s4268_s3 + $0x30] sm:$0xff]  }
 0x195   : > { %v327_v9 = vpop.permute.xlu1 %326 }
 0x196   : > { %vm400_vm3 = vcmp.eq.s32.totalorder %v2987_v10, %v327_v9  ;;  %vm401_vm9 = vcmp.eq.s32.totalorder %v2997_v16, %v327_v9 }
 0x197   : > { %vm3654_vm6 = vmor %vm400_vm3, %vm592_vm1  ;;  %vm406_vm3 = vcmp.eq.s32.totalorder %v2987_v10, %v336_v44 }
 0x198   : > { %2572 = vset.pattern.permute.xlu1 %v2665_v0  ;;  %vm3671_vm15 = vmor %vm401_vm9, %vm593_vm13  ;;  %vm407_vm9 = vcmp.eq.s32.totalorder %v2997_v16, %v336_v44 }
 0x199   : > { %1057 = vperm.xlu1 %2572, %v964_v37   ;;  %v339_v45 = vpop.permute.xlu1 %338  ;;  %v4369_v13 = vsel %vm3671_vm15, 4294967295, %v4368_v13 }
 0x19a   : > { %vm408_vm13 = vcmp.eq.s32.totalorder %v2987_v10, %v339_v45 }
 0x19e   : > { %v516_v42 = vpop.permute.xlu1 %515 }
 0x19f   : > { %vm590_vm8 = vcmp.eq.s32.totalorder %v2987_v10, %v516_v42  ;;  %vm591_vm0 = vcmp.eq.s32.totalorder %v2997_v16, %v516_v42 }
 0x1a0   : > { %v2281_v25 = vpop.f32.mrb[0].mxu0  ;;  %vm3659_vm11 = vmor %vm398_vm4, %vm590_vm8 }
 0x1a1   : > { %v2282_v5 = vpop.f32.mrb[1].mxu0  ;;  %vm3665_vm7 = vmor %vm399_vm5, %vm591_vm0 }
 0x1a2   : > { %v528_v39 = vpop.permute.xlu1 %527  ;;  %v2283_v61 = vadd.f32 %v2282_v5, %v2281_v25  ;;  %v2284_v7 = vpop.f32.mrb[2].mxu0  ;;  %vm3685_vm4 = vmor %vm3659_vm11, %vm846_vm10 }
 0x1a3   : > { %v2285_v12 = vpop.f32.mrb[3].mxu0  ;;  %vm598_vm8 = vcmp.eq.s32.totalorder %v2987_v10, %v528_v39  ;;  %v4371_v21 = vsel %vm3685_vm4, 4294967295, %v4370_v21  ;;  %vm3700_vm11 = vmor %vm3665_vm7, %vm847_vm12  ;;  %vm1104_vm4 = vcmp.eq.s32.totalorder %v2987_v10, %v3557_v6  ;;  %vm1105_vm12 = vcmp.eq.s32.totalorder %v2997_v16, %v3557_v6 }
 0x1a4   : > { %v1520_v0 = vadd.f32 %v2283_v61, %v3641_v28  ;;  %v2286_v54 = vadd.f32 %v2285_v12, %v2284_v7  ;;  %v4373_v31 = vsel %vm3700_vm11, 4294967295, %v4372_v31  ;;  %vm3713_vm15 = vmor %vm406_vm3, %vm598_vm8  ;;  %vm409_vm11 = vcmp.eq.s32.totalorder %v2997_v16, %v339_v45  ;;  %v345_v12 = vpop.permute.xlu0 %344 }
 0x1a5   : > { %v4377_v29 = vsel %vm3713_vm15, 4294967295, %v4376_v29  ;;  %vm856_vm8 = vcmp.eq.s32.totalorder %v2987_v10, %v3101_v50 }
 0x1a6   : > { %v531_v2 = vpop.permute.xlu1 %530  ;;  %v1678_v23 = vmul.f32 0.01, %v1520_v0  ;;  %v1523_v32 = vadd.f32 %v2286_v54, %v3641_v28  ;;  %vm1646_vm14 = vcmp.gt.f32.partialorder %v1520_v0, 0.0 }
 0x1a7   : > { %vm600_vm1 = vcmp.eq.s32.totalorder %v2987_v10, %v531_v2 }
 0x1a8   : > { %vm1647_vm2 = vcmp.gt.f32.partialorder %v1523_v32, 0.0  ;;  %v1679_v18 = vmul.f32 0.01, %v1523_v32  ;;  %v3676_v48 = vsel %vm1646_vm14, %v1520_v0, %v1678_v23  ;;  %vm599_vm14 = vcmp.eq.s32.totalorder %v2997_v16, %v528_v39  ;;  %vm3707_vm10 = vmor %vm408_vm13, %vm600_vm1  ;;  %v348_v43 = vpop.permute.xlu0 %347 }
 0x1a9   : > { %v4375_v26 = vsel %vm3707_vm10, 4294967295, %v4374_v26  ;;  %vm3722_vm1 = vmor %vm407_vm9, %vm599_vm14  ;;  %vm4380_vm13 = vnez %v4369_v13 }
 0x1aa   : > { %v3678_v19 = vsel %vm1647_vm2, %v1523_v32, %v1679_v18  ;;  %vm601_vm2 = vcmp.eq.s32.totalorder %v2997_v16, %v531_v2  ;;  %v4379_v46 = vsel %vm3722_vm1, 4294967295, %v4378_v46  ;;  %vm4383_vm1 = vnez %v4375_v26 }
 0x1ab   : > { %v775_v62 = vpop.permute.xlu1 %774  ;;  %v1742_v24 = vpack.c.bf16 %v3678_v19, %v3676_v48  ;;  %vm665_vm3 = vmor %vm409_vm11, %vm601_vm2 }
 0x1ac   : > { %vm848_vm0 = vcmp.eq.s32.totalorder %v2987_v10, %v775_v62  ;;  %vm849_vm5 = vcmp.eq.s32.totalorder %v2997_v16, %v775_v62 }
 0x1ad   : > { %vm912_vm7 = vmor %vm3654_vm6, %vm848_vm0  ;;  %vm857_vm6 = vcmp.eq.s32.totalorder %v2997_v16, %v3101_v50 }
 0x1ae   : > { %vm913_vm10 = vmor %vm4380_vm13, %vm849_vm5 }
 0x1af   : > { %v784_v11 = vpop.permute.xlu1 %783  ;;  %vm3730_vm15 = vmor %vm912_vm7, %vm1104_vm4  ;;  %vm4386_vm4 = vnez %v4371_v21 }
 0x1b0   : > { %v4382_v35 = vsel %vm3730_vm15, 4294967295, %v4381_v35  ;;  %vm1169_vm0 = vmor %vm913_vm10, %vm1105_vm12  ;;  %vm854_vm7 = vcmp.eq.s32.totalorder %v2987_v10, %v784_v11  ;;  %vm4389_vm10 = vnez %v4373_v31  ;;  %vm855_vm13 = vcmp.eq.s32.totalorder %v2997_v16, %v784_v11 }
 0x1b1   : > { %vm3740_vm5 = vmor %vm4383_vm1, %vm856_vm8  ;;  %vm4390_vm8 = vnez %v4382_v35 }
 0x1b2   : > { %vm3746_vm2 = vmor %vm665_vm3, %vm857_vm6  ;;  %vm4391_vm3 = vnez %v4377_v29 }
 0x1b3   : > { %v4388_v27 = vsel %vm3746_vm2, 4294967295, %v4387_v27  ;;  %vm918_vm6 = vmor %vm4391_vm3, %vm854_vm7 }
 0x1b4   : > { %v1028_v30 = vpop.permute.xlu1 %1027 }
 0x1b5   : > { %vm1102_vm9 = vcmp.eq.s32.totalorder %v2987_v10, %v1028_v30  ;;  %vm1103_vm14 = vcmp.eq.s32.totalorder %v2997_v16, %v1028_v30 }
 0x1b6   : > { %vm1166_vm11 = vmor %vm4386_vm4, %vm1102_vm9 }
 0x1b7   : > { %vm1167_vm12 = vmor %vm4389_vm10, %vm1103_vm14  ;;  %vm4392_vm14 = vnez %v4379_v46 }
 0x1b8   : > { %vm2226_vm15 = vmpackc.low %vm1169_vm0, %vm1167_vm12  ;;  %v1040_v50 = vpop.permute.xlu1 %1039 }
 0x1b9   : > { %2227 = vmatprep.mubr.msk.bf16.mxu0 %vm2226_vm15, %v2669_v33  ;;  %vm1110_vm1 = vcmp.eq.s32.totalorder %v2987_v10, %v1040_v50  ;;  %vm2228_vm9 = vmpackc.low %vm4390_vm8, %vm1166_vm11  ;;  %vm1111_vm4 = vcmp.eq.s32.totalorder %v2997_v16, %v1040_v50  ;;  %vm4393_vm8 = vnez %v4388_v27  ;;  %v4421_v50 = vmov 0 }
 0x1ba   : > { %2229 = vmatmul.mubr.msk.bf16.gmra.mrb[40].mxu0 %vm2228_vm9, %v2669_v33  ;;  %vm919_vm10 = vmor %vm4392_vm14, %vm855_vm13  ;;  %vm596_vm9 = vcmp.eq.s32.totalorder %v2987_v10, %v3401_v34 }
 0x1bb   : > { %vm1174_vm2 = vmor %vm918_vm6, %vm1110_vm1  ;;  %vm403_vm6 = vcmp.eq.s32.totalorder %v2997_v16, %v330_v57 }
 0x1bc   : > { %v1043_v36 = vpop.permute.xlu1 %1042  ;;  %vm1175_vm12 = vmor %vm919_vm10, %vm1111_vm4 }
 0x1bd   : > { %vm1112_vm0 = vcmp.eq.s32.totalorder %v2987_v10, %v1043_v36  ;;  %vm1113_vm15 = vcmp.eq.s32.totalorder %v2997_v16, %v1043_v36 }
 0x1be   : > { %vm1176_vm11 = vmor %vm3740_vm5, %vm1112_vm0 }
 0x1bf   : > { %vm1177_vm7 = vmor %vm4393_vm8, %vm1113_vm15  ;;  %vm850_vm15 = vcmp.eq.s32.totalorder %v2987_v10, %v3104_v51  ;;  %vm1108_vm8 = vcmp.eq.s32.totalorder %v2987_v10, %v3576_v41 }
 0x1c0   : > { %vm2234_vm3 = vmpackc.low %vm1177_vm7, %vm1175_vm12  ;;  %vm597_vm12 = vcmp.eq.s32.totalorder %v2997_v16, %v3401_v34  ;;  %v2597_v34 = vld [vmem:[%s4268_s3 + $0x38] sm:$0xff]  }
 0x1c1   : > { %2235 = vmatprep.mubr.msk.bf16.mxu1 %vm2234_vm3, %v2669_v33  ;;  %vm2236_vm13 = vmpackc.low %vm1176_vm11, %vm1174_vm2  ;;  %v333_v63 = vpop.permute.xlu1 %332  ;;  %vm402_vm2 = vcmp.eq.s32.totalorder %v2987_v10, %v330_v57 }
 0x1c2   : > { %2237 = vmatmul.mubr.msk.bf16.vlgmr.msra.gmra.mrb[0].mxu1 %vm2236_vm13, %v2669_v33  ;;  %vm404_vm5 = vcmp.eq.s32.totalorder %v2987_v10, %v333_v63  ;;  %vm405_vm14 = vcmp.eq.s32.totalorder %v2997_v16, %v333_v63  ;;  %vm851_vm13 = vcmp.eq.s32.totalorder %v2997_v16, %v3104_v51  ;;  %v357_v63 = vpop.permute.xlu0 %356 }
 0x1c3   : > { %2402 = vmatpush3.bf16.msra.mxu1 %v3619_v14  ;;  %vm3807_vm10 = vmor %vm404_vm5, %vm596_vm9  ;;  %vm1109_vm5 = vcmp.eq.s32.totalorder %v2997_v16, %v3576_v41 }
 0x1c4   : > { %2403 = vmatprep.subr.bf16.mxu1 %v2591_v38  ;;  %vm3826_vm7 = vmor %vm405_vm14, %vm597_vm12 }
 0x1c5   : > { %v3779_v52 = vpop.permute.xlu1 %341 }
 0x1c7   : > { %2404 = vmatpush3.bf16.msra.mxu1 %v2591_v38 }
 0x1c8   : > { %2405 = vmatprep.subr.bf16.mxu1 %v2592_v47 }
 0x1ca   : > { %v522_v49 = vpop.permute.xlu1 %521 }
 0x1cb   : > { %2406 = vmatpush3.bf16.msra.mxu1 %v2592_v47  ;;  %vm594_vm1 = vcmp.eq.s32.totalorder %v2987_v10, %v522_v49  ;;  %vm595_vm4 = vcmp.eq.s32.totalorder %v2997_v16, %v522_v49 }
 0x1cc   : > { %2407 = vmatprep.subr.bf16.mxu1 %v2593_v20  ;;  %vm3811_vm0 = vmor %vm402_vm2, %vm594_vm1 }
 0x1cd   : > { %vm3820_vm11 = vmor %vm403_vm6, %vm595_vm4 }
 0x1ce   : > { %v3787_v40 = vpop.permute.xlu1 %533  ;;  %vm3847_vm6 = vmor %vm3811_vm0, %vm850_vm15  ;;  %vm410_vm0 = vcmp.eq.s32.totalorder %v2987_v10, %v3779_v52  ;;  %vm412_vm15 = vcmp.eq.s32.totalorder %v2987_v10, %v345_v12 }
 0x1cf   : > { %2408 = vmatpush3.bf16.msra.mxu1 %v2593_v20 }
 0x1d0   : > { %2409 = vmatprep.subr.bf16.mxu1 %v2594_v53 }
 0x1d2   : > { %v3793_v58 = vpop.permute.xlu1 %536 }
 0x1d3   : > { %2410 = vmatpush3.bf16.msra.mxu1 %v2594_v53  ;;  %vm604_vm14 = vcmp.eq.s32.totalorder %v2987_v10, %v3793_v58 }
 0x1d4   : > { %2411 = vmatprep.subr.bf16.mxu1 %v2595_v8 }
 0x1d5   : > { %v2287_v55 = vpop.f32.mrb[4].mxu0 }
 0x1d6   : > { %v2288_v14 = vpop.f32.mrb[5].mxu0 }
 0x1d7   : > { %v2289_v15 = vadd.f32 %v2288_v14, %v2287_v55  ;;  %v2290_v3 = vpop.f32.mrb[6].mxu0  ;;  %v781_v25 = vpop.permute.xlu1 %780  ;;  %2412 = vmatpush3.bf16.msra.mxu1 %v2595_v8 }
 0x1d8   : > { %v2291_v9 = vpop.f32.mrb[7].mxu0  ;;  %vm852_vm3 = vcmp.eq.s32.totalorder %v2987_v10, %v781_v25  ;;  %2413 = vmatprep.subr.bf16.mxu1 %v2596_v1  ;;  %vm853_vm1 = vcmp.eq.s32.totalorder %v2997_v16, %v781_v25 }
 0x1d9   : > { %v1528_v45 = vadd.f32 %v2289_v15, %v3641_v28  ;;  %v2292_v42 = vadd.f32 %v2291_v9, %v2290_v3  ;;  %vm916_vm9 = vmor %vm3807_vm10, %vm852_vm3  ;;  %vm413_vm3 = vcmp.eq.s32.totalorder %v2997_v16, %v345_v12 }
 0x1da   : > { %vm3855_vm12 = vmor %vm3826_vm7, %vm853_vm1 }
 0x1db   : > { %v1680_v61 = vmul.f32 0.01, %v1528_v45  ;;  %v1531_v7 = vadd.f32 %v2292_v42, %v3641_v28  ;;  %vm1648_vm2 = vcmp.gt.f32.partialorder %v1528_v45, 0.0  ;;  %vm3861_vm10 = vmor %vm3820_vm11, %vm851_vm13  ;;  %v790_v4 = vpop.permute.xlu1 %789  ;;  %2414 = vmatpush3.bf16.msra.mxu1 %v2596_v1  ;;  %vm605_vm11 = vcmp.eq.s32.totalorder %v2997_v16, %v3793_v58 }
 0x1dc   : > { %vm3874_vm7 = vmor %vm916_vm9, %vm1108_vm8  ;;  %2415 = vmatprep.subr.bf16.mxu1 %v2597_v34  ;;  %vm603_vm13 = vcmp.eq.s32.totalorder %v2997_v16, %v3787_v40  ;;  %vm411_vm9 = vcmp.eq.s32.totalorder %v2997_v16, %v3779_v52 }
 0x1dd   : > { %vm1649_vm4 = vcmp.gt.f32.partialorder %v1531_v7, 0.0  ;;  %v1681_v0 = vmul.f32 0.01, %v1531_v7  ;;  %v3879_v18 = vsel %vm1648_vm2, %v1528_v45, %v1680_v61  ;;  %vm3890_vm8 = vmor %vm3855_vm12, %vm1109_vm5  ;;  %vm4412_vm2 = vcmp.eq.s32.totalorder %v2987_v10, %v3787_v40 }
 0x1de   : > { %v2293_v54 = vpop.f32.mrb[8].mxu0  ;;  %vm3904_vm1 = vmor %vm410_vm0, %vm4412_vm2  ;;  %vm860_vm12 = vcmp.eq.s32.totalorder %v2987_v10, %v3110_v60  ;;  %vm861_vm0 = vcmp.eq.s32.totalorder %v2997_v16, %v3110_v60 }
 0x1df   : > { %v2294_v32 = vpop.f32.mrb[9].mxu0  ;;  %v3881_v44 = vsel %vm1649_vm4, %v1531_v7, %v1681_v0  ;;  %vm3913_vm5 = vmor %vm412_vm15, %vm604_vm14  ;;  %2416 = vmatpush3.bf16.msra.mxu1 %v2597_v34 }
 0x1e0   : > { %v2295_v62 = vadd.f32 %v2294_v32, %v2293_v54  ;;  %v2296_v56 = vpop.f32.mrb[10].mxu0  ;;  %v1743_v21 = vpack.c.bf16 %v3881_v44, %v3879_v18  ;;  %vm3922_vm4 = vmor %vm413_vm3, %vm605_vm11  ;;  %v1034_v27 = vpop.permute.xlu1 %1033 }
 0x1e1   : > { %v2297_v11 = vpop.f32.mrb[11].mxu0  ;;  %vm3928_vm14 = vmor %vm411_vm9, %vm603_vm13  ;;  %vm1106_vm3 = vcmp.eq.s32.totalorder %v2987_v10, %v1034_v27  ;;  %vm1107_vm11 = vcmp.eq.s32.totalorder %v2997_v16, %v1034_v27 }
 0x1e2   : > { %v1536_v26 = vadd.f32 %v2295_v62, %v3641_v28  ;;  %v2298_v29 = vadd.f32 %v2297_v11, %v2296_v56  ;;  %vm3939_vm2 = vmor %vm3913_vm5, %vm860_vm12  ;;  %vm858_vm5 = vcmp.eq.s32.totalorder %v2987_v10, %v790_v4 }
 0x1e3   : > { %v4422_v50 = vsel %vm3939_vm2, 4294967295, %v4421_v50  ;;  %vm3945_vm9 = vmor %vm3847_vm6, %vm1106_vm3  ;;  %vm859_vm2 = vcmp.eq.s32.totalorder %v2997_v16, %v790_v4 }
 0x1e4   : > { %v1682_v30 = vmul.f32 0.01, %v1536_v26  ;;  %v1539_v6 = vadd.f32 %v2298_v29, %v3641_v28  ;;  %vm3951_vm15 = vmor %vm3922_vm4, %vm861_vm0  ;;  %v1046_v49 = vpop.permute.xlu1 %1045  ;;  %vm4427_vm3 = vcmp.gt.f32.partialorder %v1536_v26, 0.0 }
 0x1e5   : > { %vm1171_vm12 = vmor %vm3861_vm10, %vm1107_vm11  ;;  %vm1114_vm4 = vcmp.eq.s32.totalorder %v2987_v10, %v1046_v49  ;;  %vm1115_vm0 = vcmp.eq.s32.totalorder %v2997_v16, %v1046_v49  ;;  %v802_v49 = vpop.permute.xlu0 %801 }
 0x1e6   : > { %vm1651_vm13 = vcmp.gt.f32.partialorder %v1539_v6, 0.0  ;;  %v1683_v36 = vmul.f32 0.01, %v1539_v6  ;;  %vm2230_vm6 = vmpackc.low %vm3890_vm8, %vm1171_vm12  ;;  %v3962_v53 = vsel %vm4427_vm3, %v1536_v26, %v1682_v30 }
 0x1e7   : > { %2231 = vmatprep.mubr.msk.bf16.mxu0 %vm2230_vm6, %v2669_v33  ;;  %vm2232_vm10 = vmpackc.low %vm3874_vm7, %vm3945_vm9 }
 0x1e8   : > { %v3964_v40 = vsel %vm1651_vm13, %v1539_v6, %v1683_v36  ;;  %vm922_vm8 = vmor %vm3904_vm1, %vm858_vm5  ;;  %2233 = vmatmul.mubr.msk.bf16.gmra.mrb[44].mxu0 %vm2232_vm10, %v2669_v33  ;;  %v1049_v1 = vpop.permute.xlu1 %1048 }
 0x1e9   : > { %v2299_v38 = vpop.f32.mrb[12].mxu0  ;;  %v1744_v8 = vpack.c.bf16 %v3964_v40, %v3962_v53  ;;  %vm923_vm7 = vmor %vm3928_vm14, %vm859_vm2  ;;  %vm1116_vm9 = vcmp.eq.s32.totalorder %v2987_v10, %v1049_v1  ;;  %vm1117_vm5 = vcmp.eq.s32.totalorder %v2997_v16, %v1049_v1  ;;  %vm4432_vm14 = vnez %v4422_v50 }
 0x1ea   : > { %v2300_v47 = vpop.f32.mrb[13].mxu0  ;;  %vm3986_vm11 = vmor %vm922_vm8, %vm1114_vm4 }
 0x1eb   : > { %v2301_v52 = vadd.f32 %v2300_v47, %v2299_v38  ;;  %v2302_v20 = vpop.f32.mrb[14].mxu0  ;;  %vm3990_vm13 = vmor %vm923_vm7, %vm1115_vm0  ;;  %vm414_vm0 = vcmp.eq.s32.totalorder %v2987_v10, %v348_v43 }
 0x1ec   : > { %v2303_v57 = vpop.f32.mrb[15].mxu0  ;;  %vm3998_vm2 = vmor %vm4432_vm14, %vm1116_vm9 }
 0x1ed   : > { %v1544_v55 = vadd.f32 %v2301_v52, %v3641_v28  ;;  %v2304_v58 = vadd.f32 %v2303_v57, %v2302_v20  ;;  %vm1181_vm6 = vmor %vm3951_vm15, %vm1117_vm5  ;;  %v351_v12 = vpop.permute.xlu1 %350 }
 0x1ee   : > { %vm2238_vm3 = vmpackc.low %vm1181_vm6, %vm3990_vm13  ;;  %vm416_vm8 = vcmp.eq.s32.totalorder %v2987_v10, %v351_v12 }
 0x1ef   : > { %v1684_v14 = vmul.f32 0.01, %v1544_v55  ;;  %v1547_v15 = vadd.f32 %v2304_v58, %v3641_v28  ;;  %vm1652_vm1 = vcmp.gt.f32.partialorder %v1544_v55, 0.0  ;;  %2239 = vmatprep.mubr.msk.bf16.mxu1 %vm2238_vm3, %v2669_v33  ;;  %vm2240_vm4 = vmpackc.low %vm3998_vm2, %vm3986_vm11  ;;  %vm608_vm11 = vcmp.eq.s32.totalorder %v2987_v10, %v3407_v22 }
 0x1f0   : > { %2241 = vmatmul.mubr.msk.bf16.gmra.mrb[4].mxu1 %vm2240_vm4, %v2669_v33  ;;  %vm4033_vm9 = vmor %vm416_vm8, %vm608_vm11  ;;  %vm417_vm2 = vcmp.eq.s32.totalorder %v2997_v16, %v351_v12  ;;  %vm609_vm4 = vcmp.eq.s32.totalorder %v2997_v16, %v3407_v22 }
 0x1f1   : > { %vm1653_vm12 = vcmp.gt.f32.partialorder %v1547_v15, 0.0  ;;  %v1685_v9 = vmul.f32 0.01, %v1547_v15  ;;  %v2305_v37 = vpop.f32.mrb[16].mxu0  ;;  %v4006_v5 = vsel %vm1652_vm1, %v1544_v55, %v1684_v14  ;;  %vm415_vm1 = vcmp.eq.s32.totalorder %v2997_v16, %v348_v43  ;;  %vm673_vm8 = vmor %vm417_vm2, %vm609_vm4  ;;  %v1061_v14 = vpop.permute.xlu0 %1060 }
 0x1f2   : > { %v2306_v42 = vpop.f32.mrb[17].mxu0  ;;  %v540_v32 = vpop.permute.xlu1 %539 }
 0x1f3   : > { %v2307_v39 = vadd.f32 %v2306_v42, %v2305_v37  ;;  %v2308_v25 = vpop.f32.mrb[18].mxu0  ;;  %v4008_v61 = vsel %vm1653_vm12, %v1547_v15, %v1685_v9  ;;  %vm606_vm7 = vcmp.eq.s32.totalorder %v2987_v10, %v540_v32  ;;  %vm607_vm13 = vcmp.eq.s32.totalorder %v2997_v16, %v540_v32 }
 0x1f4   : > { %v2309_v7 = vpop.f32.mrb[19].mxu0  ;;  %v1745_v34 = vpack.c.bf16 %v4008_v61, %v4006_v5  ;;  %vm670_vm12 = vmor %vm414_vm0, %vm606_vm7  ;;  %vm1119_vm0 = vcmp.eq.s32.totalorder %v2997_v16, %v3586_v17  ;;  %v4443_v15 = vmov 0 }
 0x1f5   : > { %v1552_v2 = vadd.f32 %v2307_v39, %v3641_v28  ;;  %v2310_v0 = vadd.f32 %v2309_v7, %v2308_v25  ;;  %vm671_vm6 = vmor %vm415_vm1, %vm607_vm13 }
 0x1f7   : > { %v1686_v54 = vmul.f32 0.01, %v1552_v2  ;;  %v1555_v23 = vadd.f32 %v2310_v0, %v3641_v28  ;;  %vm1654_vm15 = vcmp.gt.f32.partialorder %v1552_v2, 0.0  ;;  %v796_v13 = vpop.permute.xlu1 %795 }
 0x1f8   : > { %vm862_vm5 = vcmp.eq.s32.totalorder %v2987_v10, %v796_v13  ;;  %vm863_vm14 = vcmp.eq.s32.totalorder %v2997_v16, %v796_v13 }
 0x1f9   : > { %vm1655_vm10 = vcmp.gt.f32.partialorder %v1555_v23, 0.0  ;;  %v1687_v51 = vmul.f32 0.01, %v1555_v23  ;;  %v4020_v4 = vsel %vm1654_vm15, %v1552_v2, %v1686_v54  ;;  %vm926_vm3 = vmor %vm670_vm12, %vm862_vm5 }
 0x1fa   : > { %vm927_vm15 = vmor %vm671_vm6, %vm863_vm14 }
 0x1fb   : > { %v4022_v62 = vsel %vm1655_vm10, %v1555_v23, %v1687_v51  ;;  %v799_v11 = vpop.permute.xlu1 %798  ;;  %vm1118_vm10 = vcmp.eq.s32.totalorder %v2987_v10, %v3586_v17  ;;  %vm4052_vm13 = vmor %vm927_vm15, %vm1119_vm0 }
 0x1fc   : > { %v1746_v56 = vpack.c.bf16 %v4022_v62, %v4020_v4  ;;  %vm864_vm11 = vcmp.eq.s32.totalorder %v2987_v10, %v799_v11  ;;  %vm4047_vm7 = vmor %vm926_vm3, %vm1118_vm10  ;;  %vm865_vm1 = vcmp.eq.s32.totalorder %v2997_v16, %v799_v11 }
 0x1fd   : > { %vm928_vm5 = vmor %vm4033_vm9, %vm864_vm11 }
 0x1fe   : > { %vm929_vm12 = vmor %vm673_vm8, %vm865_vm1  ;;  %vm866_vm1 = vcmp.eq.s32.totalorder %v2987_v10, %v802_v49 }
 0x200   : > { %v1055_v22 = vpop.permute.xlu1 %1054 }
 0x201   : > { %v2311_v29 = vpop.f32.mrb[20].mxu0  ;;  %vm1120_vm14 = vcmp.eq.s32.totalorder %v2987_v10, %v1055_v22  ;;  %vm1121_vm2 = vcmp.eq.s32.totalorder %v2997_v16, %v1055_v22 }
 0x202   : > { %vm1184_vm6 = vmor %vm928_vm5, %vm1120_vm14  ;;  %v2312_v17 = vpop.f32.mrb[21].mxu0 }
 0x203   : > { %vm1185_vm3 = vmor %vm929_vm12, %vm1121_vm2  ;;  %v2313_v46 = vadd.f32 %v2312_v17, %v2311_v29  ;;  %v2314_v35 = vpop.f32.mrb[22].mxu0  ;;  %vm420_vm2 = vcmp.eq.s32.totalorder %v2987_v10, %v357_v63 }
 0x204   : > { %v2315_v30 = vpop.f32.mrb[23].mxu0  ;;  %vm2242_vm4 = vmpackc.low %vm1185_vm3, %vm4052_vm13  ;;  %vm421_vm3 = vcmp.eq.s32.totalorder %v2997_v16, %v357_v63 }
 0x205   : > { %v1560_v6 = vadd.f32 %v2313_v46, %v3641_v28  ;;  %v2316_v27 = vadd.f32 %v2315_v30, %v2314_v35  ;;  %2243 = vmatprep.mubr.msk.bf16.mxu1 %vm2242_vm4, %v2669_v33  ;;  %vm2244_vm9 = vmpackc.low %vm1184_vm6, %vm4047_vm7  ;;  %v354_v50 = vpop.permute.xlu1 %353 }
 0x206   : > { %2245 = vmatmul.mubr.msk.bf16.gmra.mrb[8].mxu1 %vm2244_vm9, %v2669_v33  ;;  %vm418_vm11 = vcmp.eq.s32.totalorder %v2987_v10, %v354_v50  ;;  %vm419_vm13 = vcmp.eq.s32.totalorder %v2997_v16, %v354_v50  ;;  %vm867_vm9 = vcmp.eq.s32.totalorder %v2997_v16, %v802_v49 }
 0x207   : > { %v1688_v36 = vmul.f32 0.01, %v1560_v6  ;;  %v1563_v38 = vadd.f32 %v2316_v27, %v3641_v28  ;;  %vm1656_vm15 = vcmp.gt.f32.partialorder %v1560_v6, 0.0 }
 0x209   : > { %vm1657_vm10 = vcmp.gt.f32.partialorder %v1563_v38, 0.0  ;;  %v1689_v60 = vmul.f32 0.01, %v1563_v38  ;;  %v1720_v52 = vsel %vm1656_vm15, %v1560_v6, %v1688_v36 }
 0x20a   : > { %v546_v47 = vpop.permute.xlu1 %545 }
 0x20b   : > { %v1721_v20 = vsel %vm1657_vm10, %v1563_v38, %v1689_v60  ;;  %vm610_vm8 = vcmp.eq.s32.totalorder %v2987_v10, %v546_v47  ;;  %vm611_vm0 = vcmp.eq.s32.totalorder %v2997_v16, %v546_v47 }
 0x20c   : > { %v1747_v57 = vpack.c.bf16 %v1721_v20, %v1720_v52  ;;  %vm674_vm7 = vmor %vm418_vm11, %vm610_vm8 }
 0x20d   : > { %vm4074_vm12 = vmor %vm419_vm13, %vm611_vm0  ;;  %vm1124_vm0 = vcmp.eq.s32.totalorder %v2987_v10, %v1061_v14 }
 0x20e   : > { %v549_v55 = vpop.permute.xlu1 %548  ;;  %vm4080_vm6 = vmor %vm674_vm7, %vm866_vm1  ;;  %vm1125_vm7 = vcmp.eq.s32.totalorder %v2997_v16, %v1061_v14 }
 0x20f   : > { %vm612_vm5 = vcmp.eq.s32.totalorder %v2987_v10, %v549_v55  ;;  %vm613_vm14 = vcmp.eq.s32.totalorder %v2997_v16, %v549_v55  ;;  %v4444_v15 = vsel %vm4080_vm6, 4294967295, %v4443_v15  ;;  %vm931_vm1 = vmor %vm4074_vm12, %vm867_vm9 }
 0x210   : > { %vm676_vm4 = vmor %vm420_vm2, %vm612_vm5 }
 0x211   : > { %vm677_vm15 = vmor %vm421_vm3, %vm613_vm14  ;;  %vm4447_vm3 = vnez %v4444_v15 }
 0x213   : > { %v805_v3 = vpop.permute.xlu1 %804 }
 0x214   : > { %vm868_vm10 = vcmp.eq.s32.totalorder %v2987_v10, %v805_v3  ;;  %vm869_vm8 = vcmp.eq.s32.totalorder %v2997_v16, %v805_v3 }
 0x215   : > { %vm932_vm11 = vmor %vm676_vm4, %vm868_vm10 }
 0x216   : > { %vm933_vm13 = vmor %vm677_vm15, %vm869_vm8 }
 0x217   : > { %vm4092_vm6 = vmor %vm932_vm11, %vm1124_vm0 }
 0x218   : > { %v1058_v59 = vpop.permute.xlu1 %1057  ;;  %vm1189_vm5 = vmor %vm933_vm13, %vm1125_vm7 }
 0x219   : > { %v2317_v9 = vpop.f32.mrb[24].mxu0  ;;  %vm1122_vm14 = vcmp.eq.s32.totalorder %v2987_v10, %v1058_v59  ;;  %vm1123_vm2 = vcmp.eq.s32.totalorder %v2997_v16, %v1058_v59 }
 0x21a   : > { %vm1186_vm4 = vmor %vm4447_vm3, %vm1122_vm14  ;;  %v2318_v37 = vpop.f32.mrb[25].mxu0 }
 0x21b   : > { %vm1187_vm15 = vmor %vm931_vm1, %vm1123_vm2  ;;  %v2319_v45 = vadd.f32 %v2318_v37, %v2317_v9  ;;  %v2320_v42 = vpop.f32.mrb[26].mxu0 }
 0x21c   : > { %vm2246_vm10 = vmpackc.low %vm1189_vm5, %vm1187_vm15  ;;  %v2321_v39 = vpop.f32.mrb[27].mxu0 }
 0x21d   : > { %vm2248_vm12 = vmpackc.low %vm4092_vm6, %vm1186_vm4  ;;  %v1568_v25 = vadd.f32 %v2319_v45, %v3641_v28  ;;  %v2322_v7 = vadd.f32 %v2321_v39, %v2320_v42  ;;  %2247 = vmatprep.mubr.msk.bf16.mxu1 %vm2246_vm10, %v2669_v33 }
 0x21e   : > { %2249 = vmatmul.mubr.msk.bf16.gmra.mrb[12].mxu1 %vm2248_vm12, %v2669_v33 }
 0x21f   : > { %v1690_v10 = vmul.f32 0.01, %v1568_v25  ;;  %v1571_v16 = vadd.f32 %v2322_v7, %v3641_v28  ;;  %2417 = vmatprep.mubr.bf16.mxu1 %v1742_v24  ;;  %vm1658_vm9 = vcmp.gt.f32.partialorder %v1568_v25, 0.0 }
 0x221   : > { %vm1659_vm8 = vcmp.gt.f32.partialorder %v1571_v16, 0.0  ;;  %v1691_v12 = vmul.f32 0.01, %v1571_v16  ;;  %v1722_v2 = vsel %vm1658_vm9, %v1568_v25, %v1690_v10 }
 0x223   : > { %v1723_v0 = vsel %vm1659_vm8, %v1571_v16, %v1691_v12 }
 0x224   : > { %v1748_v54 = vpack.c.bf16 %v1723_v0, %v1722_v2 }
 0x226   : > { %2418 = vmatmul.mubr.bf16.vlgmr.msra.gmra.mrb[16].mxu1 %v1743_v21 }
 0x227   : > { %2421 = vmatprep.mubr.bf16.mxu1 %v1744_v8 }
 0x22e   : > { %2422 = vmatmul.mubr.bf16.gmra.mrb[20].mxu1 %v1745_v34 }
 0x22f   : > { %2425 = vmatprep.mubr.bf16.mxu1 %v1746_v56 }
 0x235   : > { %v2323_v33 = vpop.f32.mrb[28].mxu0 }
 0x236   : > { %v2324_v48 = vpop.f32.mrb[29].mxu0  ;;  %2426 = vmatmul.mubr.bf16.gmra.mrb[24].mxu1 %v1747_v57 }
 0x237   : > { %v2325_v19 = vadd.f32 %v2324_v48, %v2323_v33  ;;  %v2326_v24 = vpop.f32.mrb[30].mxu0  ;;  %2429 = vmatprep.mubr.bf16.mxu1 %v1748_v54 }
 0x238   : > { %v2327_v18 = vpop.f32.mrb[31].mxu0 }
 0x239   : > { %v1576_v44 = vadd.f32 %v2325_v19, %v3641_v28  ;;  %v2328_v21 = vadd.f32 %v2327_v18, %v2326_v24 }
 0x23b   : > { %v1692_v53 = vmul.f32 0.01, %v1576_v44  ;;  %v1579_v40 = vadd.f32 %v2328_v21, %v3641_v28  ;;  %vm1660_vm6 = vcmp.gt.f32.partialorder %v1576_v44, 0.0 }
 0x23d   : > { %vm1661_vm11 = vcmp.gt.f32.partialorder %v1579_v40, 0.0  ;;  %v1693_v8 = vmul.f32 0.01, %v1579_v40  ;;  %v1724_v5 = vsel %vm1660_vm6, %v1576_v44, %v1692_v53 }
 0x23f   : > { %v1725_v61 = vsel %vm1661_vm11, %v1579_v40, %v1693_v8 }
 0x240   : > { %v1749_v34 = vpack.c.bf16 %v1725_v61, %v1724_v5 }
 0x242   : > { %2430 = vmatmul.mubr.bf16.gmra.mrb[28].mxu1 %v1749_v34 }
 0x24d   : > { %v2329_v23 = vpop.f32.mrb[32].mxu0 }
 0x24e   : > { %v2330_v51 = vpop.f32.mrb[33].mxu0 }
 0x24f   : > { %v2331_v32 = vadd.f32 %v2330_v51, %v2329_v23  ;;  %v2332_v43 = vpop.f32.mrb[34].mxu0 }
 0x250   : > { %v2333_v4 = vpop.f32.mrb[35].mxu0 }
 0x251   : > { %v1584_v62 = vadd.f32 %v2331_v32, %v3641_v28  ;;  %v2334_v56 = vadd.f32 %v2333_v4, %v2332_v43 }
 0x253   : > { %v1694_v13 = vmul.f32 0.01, %v1584_v62  ;;  %v1587_v41 = vadd.f32 %v2334_v56, %v3641_v28  ;;  %vm1662_vm0 = vcmp.gt.f32.partialorder %v1584_v62, 0.0 }
 0x255   : > { %vm1663_vm13 = vcmp.gt.f32.partialorder %v1587_v41, 0.0  ;;  %v1695_v11 = vmul.f32 0.01, %v1587_v41  ;;  %v1726_v31 = vsel %vm1662_vm0, %v1584_v62, %v1694_v13 }
 0x257   : > { %v1727_v26 = vsel %vm1663_vm13, %v1587_v41, %v1695_v11 }
 0x258   : > { %v1750_v22 = vpack.c.bf16 %v1727_v26, %v1726_v31 }
 0x25a   : > { %2433 = vmatprep.mubr.bf16.mxu1 %v1750_v22 }
 0x265   : > { %v2335_v29 = vpop.f32.mrb[36].mxu0 }
 0x266   : > { %v2336_v17 = vpop.f32.mrb[37].mxu0 }
 0x267   : > { %v2337_v46 = vadd.f32 %v2336_v17, %v2335_v29  ;;  %v2338_v35 = vpop.f32.mrb[38].mxu0 }
 0x268   : > { %v2339_v30 = vpop.f32.mrb[39].mxu0 }
 0x269   : > { %v1592_v6 = vadd.f32 %v2337_v46, %v3641_v28  ;;  %v2340_v27 = vadd.f32 %v2339_v30, %v2338_v35 }
 0x26b   : > { %v1696_v50 = vmul.f32 0.01, %v1592_v6  ;;  %v1595_v36 = vadd.f32 %v2340_v27, %v3641_v28  ;;  %vm1664_vm7 = vcmp.gt.f32.partialorder %v1592_v6, 0.0 }
 0x26d   : > { %vm1665_vm1 = vcmp.gt.f32.partialorder %v1595_v36, 0.0  ;;  %v1697_v38 = vmul.f32 0.01, %v1595_v36  ;;  %v1728_v63 = vsel %vm1664_vm7, %v1592_v6, %v1696_v50 }
 0x26f   : > { %v1729_v60 = vsel %vm1665_vm1, %v1595_v36, %v1697_v38 }
 0x270   : > { %v1751_v47 = vpack.c.bf16 %v1729_v60, %v1728_v63 }
 0x272   : > { %2434 = vmatmul.mubr.bf16.gmra.mrb[32].mxu1 %v1751_v47 }
 0x28d   : > { %v2341_v52 = vpop.f32.mrb[40].mxu0 }
 0x28e   : > { %v2342_v20 = vpop.f32.mrb[41].mxu0 }
 0x28f   : > { %v2343_v49 = vadd.f32 %v2342_v20, %v2341_v52  ;;  %v2344_v57 = vpop.f32.mrb[42].mxu0 }
 0x290   : > { %v2345_v55 = vpop.f32.mrb[43].mxu0 }
 0x291   : > { %v1600_v58 = vadd.f32 %v2343_v49, %v3641_v28  ;;  %v2346_v14 = vadd.f32 %v2345_v55, %v2344_v57 }
 0x293   : > { %v1698_v15 = vmul.f32 0.01, %v1600_v58  ;;  %v1603_v3 = vadd.f32 %v2346_v14, %v3641_v28  ;;  %vm1666_vm5 = vcmp.gt.f32.partialorder %v1600_v58, 0.0 }
 0x295   : > { %vm1667_vm14 = vcmp.gt.f32.partialorder %v1603_v3, 0.0  ;;  %v1699_v1 = vmul.f32 0.01, %v1603_v3  ;;  %v2353_v59 = vpop.f32.mrb[0].mxu1  ;;  %v1730_v42 = vsel %vm1666_vm5, %v1600_v58, %v1698_v15 }
 0x296   : > { %v2354_v9 = vpop.f32.mrb[1].mxu1 }
 0x297   : > { %v2355_v37 = vadd.f32 %v2354_v9, %v2353_v59  ;;  %v2356_v45 = vpop.f32.mrb[2].mxu1  ;;  %v1731_v39 = vsel %vm1667_vm14, %v1603_v3, %v1699_v1  ;;  %v4145_v9 = vld [vmem:[%s4269_s4] ss:$0 sm:$0xff] }
 0x298   : > { %v2357_v25 = vpop.f32.mrb[3].mxu1  ;;  %v1752_v7 = vpack.c.bf16 %v1731_v39, %v1730_v42 }
 0x299   : > { %v1616_v10 = vadd.f32 %v2355_v37, %v3641_v28  ;;  %v2358_v16 = vadd.f32 %v2357_v25, %v2356_v45 }
 0x29a   : > { %2437 = vmatprep.mubr.bf16.mxu1 %v1752_v7 }
 0x29b   : > { %v1702_v12 = vmul.f32 0.01, %v1616_v10  ;;  %v1619_v2 = vadd.f32 %v2358_v16, %v3641_v28  ;;  %vm1670_vm2 = vcmp.gt.f32.partialorder %v1616_v10, 0.0 }
 0x29d   : > { %vm1671_vm3 = vcmp.gt.f32.partialorder %v1619_v2, 0.0  ;;  %v1703_v0 = vmul.f32 0.01, %v1619_v2  ;;  %v1734_v54 = vsel %vm1670_vm2, %v1616_v10, %v1702_v12 }
 0x29f   : > { %v1735_v33 = vsel %vm1671_vm3, %v1619_v2, %v1703_v0 }
 0x2a0   : > { %v1754_v48 = vpack.c.bf16 %v1735_v33, %v1734_v54 }
 0x2bb   : > { %v2347_v19 = vpop.f32.mrb[44].mxu0 }
 0x2bc   : > { %v2348_v24 = vpop.f32.mrb[45].mxu0 }
 0x2bd   : > { %v2349_v18 = vadd.f32 %v2348_v24, %v2347_v19  ;;  %v2350_v44 = vpop.f32.mrb[46].mxu0 }
 0x2be   : > { %v2351_v21 = vpop.f32.mrb[47].mxu0 }
 0x2bf   : > { %v1608_v53 = vadd.f32 %v2349_v18, %v3641_v28  ;;  %v2352_v40 = vadd.f32 %v2351_v21, %v2350_v44 }
 0x2c1   : > { %v1700_v8 = vmul.f32 0.01, %v1608_v53  ;;  %v1611_v5 = vadd.f32 %v2352_v40, %v3641_v28  ;;  %vm1668_vm4 = vcmp.gt.f32.partialorder %v1608_v53, 0.0 }
 0x2c3   : > { %vm1669_vm15 = vcmp.gt.f32.partialorder %v1611_v5, 0.0  ;;  %v1701_v61 = vmul.f32 0.01, %v1611_v5  ;;  %v2359_v34 = vpop.f32.mrb[4].mxu1  ;;  %v1732_v43 = vsel %vm1668_vm4, %v1608_v53, %v1700_v8 }
 0x2c4   : > { %v2360_v23 = vpop.f32.mrb[5].mxu1 }
 0x2c5   : > { %v2361_v51 = vadd.f32 %v2360_v23, %v2359_v34  ;;  %v2362_v32 = vpop.f32.mrb[6].mxu1  ;;  %v1733_v4 = vsel %vm1669_vm15, %v1611_v5, %v1701_v61 }
 0x2c6   : > { %v2363_v62 = vpop.f32.mrb[7].mxu1  ;;  %v1753_v56 = vpack.c.bf16 %v1733_v4, %v1732_v43 }
 0x2c7   : > { %v1624_v13 = vadd.f32 %v2361_v51, %v3641_v28  ;;  %v2364_v41 = vadd.f32 %v2363_v62, %v2362_v32 }
 0x2c8   : > { %2438 = vmatmul.mubr.bf16.gmra.mrb[36].mxu1 %v1753_v56 }
 0x2c9   : > { %v1704_v11 = vmul.f32 0.01, %v1624_v13  ;;  %v1627_v31 = vadd.f32 %v2364_v41, %v3641_v28  ;;  %2441 = vmatprep.mubr.bf16.mxu1 %v1754_v48  ;;  %vm1672_vm10 = vcmp.gt.f32.partialorder %v1624_v13, 0.0 }
 0x2cb   : > { %vm1673_vm12 = vcmp.gt.f32.partialorder %v1627_v31, 0.0  ;;  %v1705_v26 = vmul.f32 0.01, %v1627_v31  ;;  %v1736_v22 = vsel %vm1672_vm10, %v1624_v13, %v1704_v11 }
 0x2cd   : > { %v1737_v29 = vsel %vm1673_vm12, %v1627_v31, %v1705_v26 }
 0x2ce   : > { %v1755_v17 = vpack.c.bf16 %v1737_v29, %v1736_v22 }
 0x2d0   : > { %2442 = vmatmul.mubr.bf16.gmra.mrb[40].mxu1 %v1755_v17 }
 0x2d9   : > { %v2365_v46 = vpop.f32.mrb[8].mxu1 }
 0x2da   : > { %v2366_v35 = vpop.f32.mrb[9].mxu1 }
 0x2db   : > { %v2367_v30 = vadd.f32 %v2366_v35, %v2365_v46  ;;  %v2368_v6 = vpop.f32.mrb[10].mxu1 }
 0x2dc   : > { %v2369_v27 = vpop.f32.mrb[11].mxu1 }
 0x2dd   : > { %v1632_v50 = vadd.f32 %v2367_v30, %v3641_v28  ;;  %v2370_v36 = vadd.f32 %v2369_v27, %v2368_v6 }
 0x2df   : > { %v1706_v38 = vmul.f32 0.01, %v1632_v50  ;;  %v1635_v63 = vadd.f32 %v2370_v36, %v3641_v28  ;;  %vm1674_vm9 = vcmp.gt.f32.partialorder %v1632_v50, 0.0 }
 0x2e1   : > { %vm1675_vm8 = vcmp.gt.f32.partialorder %v1635_v63, 0.0  ;;  %v1707_v60 = vmul.f32 0.01, %v1635_v63  ;;  %v1738_v47 = vsel %vm1674_vm9, %v1632_v50, %v1706_v38 }
 0x2e3   : > { %v1739_v52 = vsel %vm1675_vm8, %v1635_v63, %v1707_v60 }
 0x2e4   : > { %v1756_v20 = vpack.c.bf16 %v1739_v52, %v1738_v47 }
 0x2e6   : > { %2445 = vmatprep.mubr.bf16.mxu1 %v1756_v20 }
 0x2f1   : > { %v2371_v49 = vpop.f32.mrb[12].mxu1 }
 0x2f2   : > { %v2372_v57 = vpop.f32.mrb[13].mxu1 }
 0x2f3   : > { %v2373_v55 = vadd.f32 %v2372_v57, %v2371_v49  ;;  %v2374_v58 = vpop.f32.mrb[14].mxu1 }
 0x2f4   : > { %v2375_v14 = vpop.f32.mrb[15].mxu1 }
 0x2f5   : > { %v1640_v15 = vadd.f32 %v2373_v55, %v3641_v28  ;;  %v2376_v3 = vadd.f32 %v2375_v14, %v2374_v58 }
 0x2f7   : > { %v1708_v1 = vmul.f32 0.01, %v1640_v15  ;;  %v1643_v59 = vadd.f32 %v2376_v3, %v3641_v28  ;;  %vm1676_vm6 = vcmp.gt.f32.partialorder %v1640_v15, 0.0 }
 0x2f9   : > { %vm1677_vm11 = vcmp.gt.f32.partialorder %v1643_v59, 0.0  ;;  %v1709_v37 = vmul.f32 0.01, %v1643_v59  ;;  %v2419_v45 = vpop.f32.mrb[16].mxu1  ;;  %v1740_v10 = vsel %vm1676_vm6, %v1640_v15, %v1708_v1 }
 0x2fa   : > { %v1872_v42 = vadd.f32 %v2419_v45, %v4145_v9  ;;  %v1863_v39 = vpop.f32.mrb[17].mxu1 }
 0x2fb   : > { %v1864_v25 = vadd.f32 %v4145_v9, %v1863_v39  ;;  %v2420_v7 = vpop.f32.mrb[18].mxu1  ;;  %v1741_v16 = vsel %vm1677_vm11, %v1643_v59, %v1709_v37 }
 0x2fc   : > { %1992 = vst [vmem:[%s4149_s17 + $0x10] sm:$0xff] %v1872_v42  ;;  %v1875_v28 = vadd.f32 %v2420_v7, %v4145_v9  ;;  %v1866_v12 = vpop.f32.mrb[19].mxu1  ;;  %v1757_v2 = vpack.c.bf16 %v1741_v16, %v1740_v10 }
 0x2fd   : > { %1990 = vst [vmem:[%s4149_s17] sm:$0xff] %v1864_v25  ;;  %v1867_v0 = vadd.f32 %v4145_v9, %v1866_v12 }
 0x2fe   : > { %1993 = vst [vmem:[%s4149_s17 + $0x18] sm:$0xff] %v1875_v28  ;;  %2446 = vmatmul.mubr.bf16.gmra.mrb[44].mxu1 %v1757_v2 }
 0x2ff   : > { %1991 = vst [vmem:[%s4149_s17 + $0x8] sm:$0xff] %v1867_v0 }
 0x301   : > { %v2423_v54 = vpop.f32.mrb[20].mxu1 }
 0x302   : > { %v1888_v33 = vadd.f32 %v2423_v54, %v4145_v9  ;;  %v1879_v48 = vpop.f32.mrb[21].mxu1 }
 0x303   : > { %v1880_v19 = vadd.f32 %v4145_v9, %v1879_v48  ;;  %v2424_v24 = vpop.f32.mrb[22].mxu1 }
 0x304   : > { %1996 = vst [vmem:[%s4149_s17 + $0x30] sm:$0xff] %v1888_v33  ;;  %v1891_v18 = vadd.f32 %v2424_v24, %v4145_v9  ;;  %v1882_v44 = vpop.f32.mrb[23].mxu1 }
 0x305   : > { %1994 = vst [vmem:[%s4149_s17 + $0x20] sm:$0xff] %v1880_v19  ;;  %v1883_v21 = vadd.f32 %v4145_v9, %v1882_v44 }
 0x306   : > { %1997 = vst [vmem:[%s4149_s17 + $0x38] sm:$0xff] %v1891_v18 }
 0x307   : > { %1995 = vst [vmem:[%s4149_s17 + $0x28] sm:$0xff] %v1883_v21 }
 0x309   : > { %v2427_v53 = vpop.f32.mrb[24].mxu1 }
 0x30a   : > { %v1904_v40 = vadd.f32 %v2427_v53, %v4145_v9  ;;  %v1895_v8 = vpop.f32.mrb[25].mxu1 }
 0x30b   : > { %v1896_v5 = vadd.f32 %v4145_v9, %v1895_v8  ;;  %v2428_v61 = vpop.f32.mrb[26].mxu1 }
 0x30c   : > { %2000 = vst [vmem:[%s4149_s17 + $0x50] sm:$0xff] %v1904_v40  ;;  %v1907_v34 = vadd.f32 %v2428_v61, %v4145_v9  ;;  %v1898_v23 = vpop.f32.mrb[27].mxu1 }
 0x30d   : > { %1998 = vst [vmem:[%s4149_s17 + $0x40] sm:$0xff] %v1896_v5  ;;  %v1899_v51 = vadd.f32 %v4145_v9, %v1898_v23 }
 0x30e   : > { %2001 = vst [vmem:[%s4149_s17 + $0x58] sm:$0xff] %v1907_v34 }
 0x30f   : > { %1999 = vst [vmem:[%s4149_s17 + $0x48] sm:$0xff] %v1899_v51 }
 0x315   : > { %v2431_v32 = vpop.f32.mrb[28].mxu1 }
 0x316   : > { %v1920_v43 = vadd.f32 %v2431_v32, %v4145_v9  ;;  %v1911_v4 = vpop.f32.mrb[29].mxu1 }
 0x317   : > { %v1912_v62 = vadd.f32 %v4145_v9, %v1911_v4  ;;  %v2432_v56 = vpop.f32.mrb[30].mxu1 }
 0x318   : > { %2004 = vst [vmem:[%s4149_s17 + $0x70] sm:$0xff] %v1920_v43  ;;  %v1923_v13 = vadd.f32 %v2432_v56, %v4145_v9  ;;  %v1914_v41 = vpop.f32.mrb[31].mxu1 }
 0x319   : > { %2002 = vst [vmem:[%s4149_s17 + $0x60] sm:$0xff] %v1912_v62  ;;  %v1915_v11 = vadd.f32 %v4145_v9, %v1914_v41 }
 0x31a   : > { %2005 = vst [vmem:[%s4149_s17 + $0x78] sm:$0xff] %v1923_v13 }
 0x31b   : > { %2003 = vst [vmem:[%s4149_s17 + $0x68] sm:$0xff] %v1915_v11 }
 0x345   : > { %v2435_v31 = vpop.f32.mrb[32].mxu1 }
 0x346   : > { %v1936_v26 = vadd.f32 %v2435_v31, %v4145_v9  ;;  %v1927_v22 = vpop.f32.mrb[33].mxu1 }
 0x347   : > { %v1928_v29 = vadd.f32 %v4145_v9, %v1927_v22  ;;  %v2436_v17 = vpop.f32.mrb[34].mxu1 }
 0x348   : > { %2008 = vst [vmem:[%s4149_s17 + $0x90] sm:$0xff] %v1936_v26  ;;  %v1939_v46 = vadd.f32 %v2436_v17, %v4145_v9  ;;  %v1930_v35 = vpop.f32.mrb[35].mxu1 }
 0x349   : > { %2006 = vst [vmem:[%s4149_s17 + $0x80] sm:$0xff] %v1928_v29  ;;  %v1931_v30 = vadd.f32 %v4145_v9, %v1930_v35 }
 0x34a   : > { %2009 = vst [vmem:[%s4149_s17 + $0x98] sm:$0xff] %v1939_v46 }
 0x34b   : > { %2007 = vst [vmem:[%s4149_s17 + $0x88] sm:$0xff] %v1931_v30 }
 0x39b   : > { %v2439_v6 = vpop.f32.mrb[36].mxu1 }
 0x39c   : > { %v1952_v27 = vadd.f32 %v2439_v6, %v4145_v9  ;;  %v1943_v50 = vpop.f32.mrb[37].mxu1 }
 0x39d   : > { %v1944_v36 = vadd.f32 %v4145_v9, %v1943_v50  ;;  %v2440_v38 = vpop.f32.mrb[38].mxu1 }
 0x39e   : > { %2012 = vst [vmem:[%s4149_s17 + $0xb0] sm:$0xff] %v1952_v27  ;;  %v1955_v63 = vadd.f32 %v2440_v38, %v4145_v9  ;;  %v1946_v60 = vpop.f32.mrb[39].mxu1 }
 0x39f   : > { %2010 = vst [vmem:[%s4149_s17 + $0xa0] sm:$0xff] %v1944_v36  ;;  %v1947_v47 = vadd.f32 %v4145_v9, %v1946_v60 }
 0x3a0   : > { %2013 = vst [vmem:[%s4149_s17 + $0xb8] sm:$0xff] %v1955_v63 }
 0x3a1   : > { %2011 = vst [vmem:[%s4149_s17 + $0xa8] sm:$0xff] %v1947_v47 }
 0x3a3   : > { %v2443_v52 = vpop.f32.mrb[40].mxu1 }
 0x3a4   : > { %v1968_v20 = vadd.f32 %v2443_v52, %v4145_v9  ;;  %v1959_v49 = vpop.f32.mrb[41].mxu1 }
 0x3a5   : > { %v1960_v57 = vadd.f32 %v4145_v9, %v1959_v49  ;;  %v2444_v55 = vpop.f32.mrb[42].mxu1 }
 0x3a6   : > { %2016 = vst [vmem:[%s4149_s17 + $0xd0] sm:$0xff] %v1968_v20  ;;  %v1971_v58 = vadd.f32 %v2444_v55, %v4145_v9  ;;  %v1962_v14 = vpop.f32.mrb[43].mxu1 }
 0x3a7   : > { %2014 = vst [vmem:[%s4149_s17 + $0xc0] sm:$0xff] %v1960_v57  ;;  %v1963_v15 = vadd.f32 %v4145_v9, %v1962_v14 }
 0x3a8   : > { %2017 = vst [vmem:[%s4149_s17 + $0xd8] sm:$0xff] %v1971_v58 }
 0x3a9   : > { %2015 = vst [vmem:[%s4149_s17 + $0xc8] sm:$0xff] %v1963_v15 }
 0x3d1   : > { %v2447_v3 = vpop.f32.mrb[44].mxu1 }
 0x3d2   : > { %v1984_v1 = vadd.f32 %v2447_v3, %v4145_v9  ;;  %v1975_v59 = vpop.f32.mrb[45].mxu1 }
 0x3d3   : > { %v1976_v37 = vadd.f32 %v4145_v9, %v1975_v59  ;;  %v2448_v45 = vpop.f32.mrb[46].mxu1 }
 0x3d4   : > { %2020 = vst [vmem:[%s4149_s17 + $0xf0] sm:$0xff] %v1984_v1  ;;  %v1987_v42 = vadd.f32 %v2448_v45, %v4145_v9  ;;  %v1978_v39 = vpop.f32.mrb[47].mxu1 }
 0x3d5   : > { %2018 = vst [vmem:[%s4149_s17 + $0xe0] sm:$0xff] %v1976_v37  ;;  %v1979_v25 = vadd.f32 %v4145_v9, %v1978_v39 }
 0x3d6   : > { %2021 = vst [vmem:[%s4149_s17 + $0xf8] sm:$0xff] %v1987_v42 }
 0x3d7   : > { %2019 = vst [vmem:[%s4149_s17 + $0xe8] sm:$0xff] %v1979_v25 }
 0x3d8   : > { %2614 = shalt.err (!%p2611_p3)
}
 0x3d9   : > { %s2615_s9 = scalar_lea.hbm %s4214_s6, 4096  ;;  %s2619_s14 = scalar_lea.hbm %s4270_s5, 8192 }
 0x3da   : > { %p2616_p4 = scmp.ne.s32.totalorder %s4214_s6, %s2615_s9  ;;  %p2620_p9 = scmp.lt.u32.totalorder %s4214_s6, %s4270_s5 }
 0x3db   : > { %p2621_p10 = scmp.lt.u32.totalorder %s2619_s14, %s2615_s9  ;;  %p2623_p12 = scmp.lt.u32.totalorder %s2615_s9, %s4214_s6 }
 0x3dc   : > { %p2617_p7 = pnand %p2616_p4, %p2741_p5 }
 0x3dd   : > { %p2622_p11 = por %p2621_p10, %p2620_p9 }
 0x3de   : > { %p2618_p8 = pneg %p2617_p7 }
 0x3df   : > { %p2624_p13 = por %p2623_p12, %p2622_p11 }
 0x3e1   : > { %p2625_p0 = pnand %p2624_p13, %p2618_p8 }
 0x3e3   : > { %2628 = shalt.err (!%p2625_p0)
}
 0x3e4   : > { %s2671_s17 = smov 128   ;;  %s2672_s23 = smov 8  }
 0x3e5   : > { %2465 = dma.vmem_to_hbm [thread:$0]  (%p2741_p5), %s4216_s25, 4096, %s4214_s6, %s4224_s22, %s2671_s17, %s2671_s17, %s2672_s23  }
 0x3e6 PF: > { %p2471_p1 = scmp.ge.s32.totalorder %s2663_s21, 2  ;;  %s2051_s26 = sand.u32 1, %s2651_s18  }
 0x3e7   : > { %s2052_s30 = scalar_lea.sflag [#allocation3], %s2051_s26 }
 0x3e8   : > { %p2468_p2 = pnand %p2471_p1, %p2745_p6 }
 0x3ea   : > { %2646 = dma.done.wait (!%p2468_p2), %s2052_s30, 4096  }
 0x3eb   : > { %2648 = vsyncadd (!%p2468_p2), %s2052_s30, 4294963200  ;;  %p15_p3 = scmp.ge.s32.totalorder %s2728_s24, 4   ;;  %s4448_s18 = smov %s2655_s19 }
 0x3ec   : > { %s4449_s19 = smov %s2659_s20  ;;  %s4450_s20 = smov %s2739_s27 }
 0x3ed   : > { %s4451_s21 = smov %s2728_s24  ;;  %17 = sbr.rel (!%p15_p3) target bundleno = 3 (0x3), region = 75 }
 0x3f4   :  { %2057 = vsyncpa [#allocation3], 1 }
 0x3f5   :  { %2059 = vsyncpa [#allocation3 + $0x1], 1 }

</bundles_post_ra>
